<compile_context>
chip_gen: v7x
topology: tpu7x:2x2x1
jax: 0.10.0
libtpu: 0.0.40
codegen_flags: <defaults>
</compile_context>

<pallas_src>
import functools

import jax
import jax.numpy as jnp
from jax import lax
from jax.experimental import pallas as pl
from jax.experimental.pallas import tpu as pltpu


def _round_up(x, m):
    return ((x + m - 1) // m) * m


def _mix(w_oc_ic, tap, use_fma):
    """Channel contraction (Cout, Cin) x (Cin, S) -> (Cout, S) on flat spatial axis."""
    if use_fma:
        # Small channel counts: outer-product broadcast-FMAs on the VPU.
        cin = tap.shape[0]
        acc = w_oc_ic[:, 0:1] * tap[0:1, :]
        for ci in range(1, cin):
            acc = acc + w_oc_ic[:, ci:ci + 1] * tap[ci:ci + 1, :]
        return acc
    # Larger channel counts: feed the MXU directly (lane dim S is a 128-multiple).
    return jnp.dot(w_oc_ic, tap, preferred_element_type=jnp.float32)


# ---------------------------------------------------------------------------
# Fused kernel: relu(bn1) -> 1x1 tconv -> relu(bn2) -> KxK tconv -> a*x + b*out
# Grid = (N,).  Everything is carried in a flat (C, S=H*W) lane-dense layout.
# ---------------------------------------------------------------------------
def _fused_block_kernel(x_ref, w1t_ref, s1_ref, sh1_ref, sh2_ref, wf_ref, cm_ref,
                        out_ref, ysc, *, W, K, dilation, pad, pad_lanes, a, b,
                        use_fma):
    cin = x_ref.shape[1]
    S = x_ref.shape[2]
    d, P = dilation, pad

    # ---- pointwise stage: relu(bn1(x)) -> 1x1 tconv (+bn2 scale) -> relu(+bn2 shift)
    x = x_ref[0].astype(jnp.float32)                       # (Cin, S) lane-dense load
    v = jnp.maximum(x * s1_ref[...] + sh1_ref[...], 0.0)   # relu(bn1(x))
    u = _mix(w1t_ref[...], v, use_fma)                     # 1x1 tconv (+ folded bn2 scale)
    y = jnp.maximum(u + sh2_ref[...], 0.0)                 # relu(bn2(.))

    # ---- flat padded-activation scratch: zero only the two border strips ------
    if pad_lanes > 0:
        zstrip = jnp.zeros((cin, pad_lanes), jnp.float32)
        ysc[:, 0:pad_lanes] = zstrip                       # top halo (128-aligned)
        ysc[:, pad_lanes + S:2 * pad_lanes + S] = zstrip   # bottom halo (128-aligned)
    ysc[:, pad_lanes:pad_lanes + S] = y                    # aligned, unmasked interior

    # ---- KxK transposed conv (flipped-kernel conv) via per-tap channel mixes ---
    wf = wf_ref[...]                                       # (K*K, Cout, Cin)
    cm = cm_ref[...]                                       # (K, S) column-validity masks
    # Interior origin of the logical zero-padded image inside the scratch:
    base = pad_lanes - (P * W + P)                         # static, >= 0
    acc = None
    for kw in range(K):
        part = None
        for kh in range(K):
            start = base + kh * d * W + kw * d             # static lane offset
            tap = ysc[:, start:start + S]                  # (Cin, S) shifted load
            t = _mix(wf[kh * K + kw], tap, use_fma)
            part = t if part is None else part + t
        if P > 0:
            part = part * cm[kw:kw + 1]                    # mask wrapped columns
        acc = part if acc is None else acc + part

    # ---- identity residual (Cin == Cout) + lane-dense store --------------------
    out_ref[0] = (a * x + b * acc).astype(out_ref.dtype)


# ---------------------------------------------------------------------------
# Wrapper
# ---------------------------------------------------------------------------
def residual_block_2d_transpose_conv(x_nchw, params, *, kernelsize, stride,
                                     padding, dilation, o_padding, a, b):
    assert stride == 1 and o_padding == 0, "only stride=1 / o_padding=0 path"
    N, Cin, H, W = x_nchw.shape
    K, d = kernelsize, dilation
    w1, w2, g1, b1, m1, v1, g2, b2, m2, v2 = (
        params["w1"], params["w2"], params["g1"], params["b1"], params["m1"],
        params["v1"], params["g2"], params["b2"], params["m2"], params["v2"])
    Cout = w2.shape[1]
    assert Cin == Cout, "identity residual requires channels_in == channels_out"
    eps = 1e-5

    # Fold BN (eval mode, running stats) into scale/shift; fold bn2 scale into w1.
    s1 = g1 / jnp.sqrt(v1 + eps)
    sh1 = b1 - m1 * s1
    s2 = g2 / jnp.sqrt(v2 + eps)
    sh2 = b2 - m2 * s2
    w1t = (w1[:, :, 0, 0] * s2[None, :]).T                  # (Cout_mid=Cin, Cin)

    # Transposed-conv-as-conv geometry (stride=1, o_padding=0): symmetric pad P,
    # spatially flipped kernel, same dilation.
    P = d * (K - 1) - padding
    assert P >= 0
    H_out = H - 2 * padding + d * (K - 1)
    W_out = W - 2 * padding + d * (K - 1)
    assert (H_out, W_out) == (H, W), "residual add requires matching spatial dims"
    # wflip_t[kh*K + kw, o, i] = w2[i, o, K-1-kh, K-1-kw]
    wflip_t = jnp.transpose(jnp.flip(w2, axis=(2, 3)),
                            (2, 3, 1, 0)).reshape(K * K, Cout, Cin)

    S = H * W
    margin = P * W + P                       # flat halo that holds the zero border
    pad_lanes = _round_up(margin, 128) if margin > 0 else 0
    S_alloc = S + 2 * pad_lanes

    # Column-validity masks (one per kw tap, periodic in W), built outside the kernel.
    col = jnp.tile(jnp.arange(W, dtype=jnp.int32), H)        # (S,)
    cmask = jnp.stack(
        [((col + kw * d - P >= 0) & (col + kw * d - P < W)).astype(jnp.float32)
         for kw in range(K)])                                 # (K, S)

    x_flat = x_nchw.reshape(N, Cin, S)       # metadata-only reshape of contiguous NCHW
    out_dtype = x_nchw.dtype
    use_fma = max(Cin, Cout) <= 8            # tiny channel counts stay on the VPU

    # Explicit VMEM budget: scratch + double-buffered input/output blocks + weights.
    in_bytes = Cin * S * jnp.dtype(x_nchw.dtype).itemsize
    out_bytes = Cout * S * jnp.dtype(out_dtype).itemsize
    w_bytes = 4 * (Cin * Cin + 3 * Cin + K * K * Cout * Cin + K * S)
    needed = 4 * Cin * S_alloc + 2 * (in_bytes + out_bytes + w_bytes)
    vmem_limit = int(min(max(needed + (8 << 20), 32 << 20), 64 << 20))

    kernel = functools.partial(
        _fused_block_kernel, W=W, K=K, dilation=d, pad=P, pad_lanes=pad_lanes,
        a=float(a), b=float(b), use_fma=use_fma)

    out_flat = pl.pallas_call(
        kernel,
        out_shape=jax.ShapeDtypeStruct((N, Cout, S), out_dtype),
        grid_spec=pltpu.PrefetchScalarGridSpec(
            num_scalar_prefetch=0,
            grid=(N,),
            in_specs=[
                pl.BlockSpec((1, Cin, S), lambda n: (n, 0, 0)),       # x, lane-dense
                pl.BlockSpec((Cin, Cin), lambda n: (0, 0)),           # w1 (+bn2 scale)
                pl.BlockSpec((Cin, 1), lambda n: (0, 0)),             # bn1 scale
                pl.BlockSpec((Cin, 1), lambda n: (0, 0)),             # bn1 shift
                pl.BlockSpec((Cin, 1), lambda n: (0, 0)),             # bn2 shift
                pl.BlockSpec((K * K, Cout, Cin), lambda n: (0, 0, 0)),  # flipped w2
                pl.BlockSpec((K, S), lambda n: (0, 0)),               # column masks
            ],
            out_specs=pl.BlockSpec((1, Cout, S), lambda n: (n, 0, 0)),
            scratch_shapes=[pltpu.VMEM((Cin, S_alloc), jnp.float32)],
        ),
        compiler_params=pltpu.CompilerParams(
            dimension_semantics=("parallel",),
            vmem_limit_bytes=vmem_limit),
    )(x_flat, w1t, s1.reshape(Cin, 1), sh1.reshape(Cin, 1), sh2.reshape(Cin, 1),
      wflip_t, cmask)

    # Free reshape of the lane-dense (N, Cout, H*W) output back to NCHW.
    return out_flat.reshape(N, Cout, H, W)


# ---------------------------------------------------------------------------
# Pure-JAX reference (same eval-mode semantics) for validation.
# ---------------------------------------------------------------------------
def reference_forward(x, params, *, kernelsize, stride, padding, dilation,
                      o_padding, a, b):
    w1, w2 = params["w1"], params["w2"]
    eps = 1e-5
    s1 = params["g1"] / jnp.sqrt(params["v1"] + eps)
    sh1 = params["b1"] - params["m1"] * s1
    s2 = params["g2"] / jnp.sqrt(params["v2"] + eps)
    sh2 = params["b2"] - params["m2"] * s2

    out = jnp.maximum(x * s1[None, :, None, None] + sh1[None, :, None, None], 0.0)
    out = jnp.einsum("nchw,cd->ndhw", out, w1[:, :, 0, 0])
    out = jnp.maximum(out * s2[None, :, None, None] + sh2[None, :, None, None], 0.0)

    K = kernelsize
    pad = dilation * (K - 1) - padding
    w_oihw = jnp.transpose(jnp.flip(w2, axis=(2, 3)), (1, 0, 2, 3))
    out = lax.conv_general_dilated(
        out, w_oihw, window_strides=(1, 1),
        padding=[(pad, pad + o_padding), (pad, pad + o_padding)],
        lhs_dilation=(stride, stride), rhs_dilation=(dilation, dilation),
        dimension_numbers=("NCHW", "OIHW", "NCHW"))
    return a * x + b * out


if __name__ == "__main__":
    # Module configuration (upsample=None, channels_in == channels_out so the
    # identity residual add is shape-consistent).
    N, C_in, C_out, H, W = 2, 4, 4, 16, 16
    kernelsize, stride, padding, dilation, o_padding = 3, 1, 1, 1, 0
    a, b = 1.0, 0.5

    key = jax.random.PRNGKey(0)
    ks = jax.random.split(key, 8)
    x = jax.random.normal(ks[0], (N, C_in, H, W), jnp.float32)
    params = {
        # ConvTranspose2d weights: (in_channels, out_channels, kH, kW)
        "w1": jax.random.normal(ks[1], (C_in, C_in, 1, 1), jnp.float32) * 0.3,
        "w2": jax.random.normal(ks[2], (C_in, C_out, kernelsize, kernelsize),
                                jnp.float32) * 0.2,
        # BatchNorm2d params / running stats (eval mode)
        "g1": jax.random.normal(ks[3], (C_in,), jnp.float32) * 0.1 + 1.0,
        "b1": jax.random.normal(ks[4], (C_in,), jnp.float32) * 0.1,
        "m1": jax.random.normal(ks[5], (C_in,), jnp.float32) * 0.1,
        "v1": jax.random.uniform(ks[6], (C_in,), jnp.float32, 0.5, 1.5),
        "g2": jnp.linspace(0.9, 1.1, C_in, dtype=jnp.float32),
        "b2": jnp.linspace(-0.1, 0.1, C_in, dtype=jnp.float32),
        "m2": jnp.linspace(-0.05, 0.05, C_in, dtype=jnp.float32),
        "v2": jnp.linspace(0.8, 1.2, C_in, dtype=jnp.float32),
    }

    cfg = dict(kernelsize=kernelsize, stride=stride, padding=padding,
               dilation=dilation, o_padding=o_padding, a=a, b=b)

    out = residual_block_2d_transpose_conv(x, params, **cfg)
    out = jax.block_until_ready(out)

    ref = jax.block_until_ready(reference_forward(x, params, **cfg))
    assert out.shape == (N, C_out, H, W), out.shape
    assert jnp.allclose(out, ref, atol=1e-4, rtol=1e-4), \
        f"max err {jnp.max(jnp.abs(out - ref))}"

    print("KERNEL_OK")
</pallas_src>

<mosaic_0001>
module attributes {stable_mosaic.version = 11 : i64} {
  func.func @_fused_block_kernel(%arg0: i32, %arg1: memref<1x4x256xf32, #tpu.memory_space<vmem>>, %arg2: memref<4x4xf32, #tpu.memory_space<vmem>>, %arg3: memref<4x1xf32, #tpu.memory_space<vmem>>, %arg4: memref<4x1xf32, #tpu.memory_space<vmem>>, %arg5: memref<4x1xf32, #tpu.memory_space<vmem>>, %arg6: memref<9x4x4xf32, #tpu.memory_space<vmem>>, %arg7: memref<3x256xf32, #tpu.memory_space<vmem>>, %arg8: memref<1x4x256xf32, #tpu.memory_space<vmem>>, %arg9: memref<4x512xf32, #tpu.memory_space<vmem>>) attributes {dimension_semantics = [#tpu.dimension_semantics<parallel>], iteration_bounds = array<i64: 2>, scalar_prefetch = 0 : i64, scratch_operands = 1 : i64, tpu.core_type = #tpu.core_type<tc>, window_params = [{transform_indices = @transform_0, window_bounds = array<i64: 1, 4, 256>}, {pipeline_mode = #tpu.pipeline_mode<synchronous>, transform_indices = @transform_1, window_bounds = array<i64: 4, 4>}, {pipeline_mode = #tpu.pipeline_mode<synchronous>, transform_indices = @transform_2, window_bounds = array<i64: 4, 1>}, {pipeline_mode = #tpu.pipeline_mode<synchronous>, transform_indices = @transform_3, window_bounds = array<i64: 4, 1>}, {pipeline_mode = #tpu.pipeline_mode<synchronous>, transform_indices = @transform_4, window_bounds = array<i64: 4, 1>}, {pipeline_mode = #tpu.pipeline_mode<synchronous>, transform_indices = @transform_5, window_bounds = array<i64: 9, 4, 4>}, {pipeline_mode = #tpu.pipeline_mode<synchronous>, transform_indices = @transform_6, window_bounds = array<i64: 3, 256>}, {transform_indices = @transform_7, window_bounds = array<i64: 1, 4, 256>}]} {
    %c0 = arith.constant 0 : index
    %c0_0 = arith.constant 0 : index
    %c0_1 = arith.constant 0 : index
    %0 = vector.load %arg1[%c0, %c0_0, %c0_1] : memref<1x4x256xf32, #tpu.memory_space<vmem>>, vector<1x4x256xf32>
    %1 = vector.shape_cast %0 : vector<1x4x256xf32> to vector<4x256xf32>
    %c0_2 = arith.constant 0 : index
    %c0_3 = arith.constant 0 : index
    %2 = vector.load %arg3[%c0_2, %c0_3] : memref<4x1xf32, #tpu.memory_space<vmem>>, vector<4x1xf32>
    %3 = vector.broadcast %2 : vector<4x1xf32> to vector<4x256xf32>
    %4 = arith.mulf %1, %3 : vector<4x256xf32>
    %c0_4 = arith.constant 0 : index
    %c0_5 = arith.constant 0 : index
    %5 = vector.load %arg4[%c0_4, %c0_5] : memref<4x1xf32, #tpu.memory_space<vmem>>, vector<4x1xf32>
    %6 = vector.broadcast %5 : vector<4x1xf32> to vector<4x256xf32>
    %7 = arith.addf %4, %6 : vector<4x256xf32>
    %cst = arith.constant 0.000000e+00 : f32
    %8 = vector.broadcast %cst : f32 to vector<4x256xf32>
    %9 = arith.maximumf %7, %8 : vector<4x256xf32>
    %c0_6 = arith.constant 0 : index
    %c0_7 = arith.constant 0 : index
    %10 = vector.load %arg2[%c0_6, %c0_7] : memref<4x4xf32, #tpu.memory_space<vmem>>, vector<4x4xf32>
    %11 = vector.extract_strided_slice %10 {offsets = [0, 0], sizes = [4, 1], strides = [1, 1]} : vector<4x4xf32> to vector<4x1xf32>
    %12 = vector.extract_strided_slice %9 {offsets = [0, 0], sizes = [1, 256], strides = [1, 1]} : vector<4x256xf32> to vector<1x256xf32>
    %13 = vector.broadcast %11 : vector<4x1xf32> to vector<4x256xf32>
    %14 = vector.broadcast %12 : vector<1x256xf32> to vector<4x256xf32>
    %15 = arith.mulf %13, %14 : vector<4x256xf32>
    %16 = vector.extract_strided_slice %10 {offsets = [0, 1], sizes = [4, 1], strides = [1, 1]} : vector<4x4xf32> to vector<4x1xf32>
    %17 = vector.extract_strided_slice %9 {offsets = [1, 0], sizes = [1, 256], strides = [1, 1]} : vector<4x256xf32> to vector<1x256xf32>
    %18 = vector.broadcast %16 : vector<4x1xf32> to vector<4x256xf32>
    %19 = vector.broadcast %17 : vector<1x256xf32> to vector<4x256xf32>
    %20 = arith.mulf %18, %19 : vector<4x256xf32>
    %21 = arith.addf %15, %20 : vector<4x256xf32>
    %22 = vector.extract_strided_slice %10 {offsets = [0, 2], sizes = [4, 1], strides = [1, 1]} : vector<4x4xf32> to vector<4x1xf32>
    %23 = vector.extract_strided_slice %9 {offsets = [2, 0], sizes = [1, 256], strides = [1, 1]} : vector<4x256xf32> to vector<1x256xf32>
    %24 = vector.broadcast %22 : vector<4x1xf32> to vector<4x256xf32>
    %25 = vector.broadcast %23 : vector<1x256xf32> to vector<4x256xf32>
    %26 = arith.mulf %24, %25 : vector<4x256xf32>
    %27 = arith.addf %21, %26 : vector<4x256xf32>
    %28 = vector.extract_strided_slice %10 {offsets = [0, 3], sizes = [4, 1], strides = [1, 1]} : vector<4x4xf32> to vector<4x1xf32>
    %29 = vector.extract_strided_slice %9 {offsets = [3, 0], sizes = [1, 256], strides = [1, 1]} : vector<4x256xf32> to vector<1x256xf32>
    %30 = vector.broadcast %28 : vector<4x1xf32> to vector<4x256xf32>
    %31 = vector.broadcast %29 : vector<1x256xf32> to vector<4x256xf32>
    %32 = arith.mulf %30, %31 : vector<4x256xf32>
    %33 = arith.addf %27, %32 : vector<4x256xf32>
    %c0_8 = arith.constant 0 : index
    %c0_9 = arith.constant 0 : index
    %34 = vector.load %arg5[%c0_8, %c0_9] : memref<4x1xf32, #tpu.memory_space<vmem>>, vector<4x1xf32>
    %35 = vector.broadcast %34 : vector<4x1xf32> to vector<4x256xf32>
    %36 = arith.addf %33, %35 : vector<4x256xf32>
    %cst_10 = arith.constant 0.000000e+00 : f32
    %37 = vector.broadcast %cst_10 : f32 to vector<4x256xf32>
    %38 = arith.maximumf %36, %37 : vector<4x256xf32>
    %cst_11 = arith.constant 0.000000e+00 : f32
    %39 = vector.broadcast %cst_11 : f32 to vector<4x128xf32>
    %c0_12 = arith.constant 0 : index
    %c0_13 = arith.constant 0 : index
    %40 = vector.load %arg9[%c0_12, %c0_13] : memref<4x512xf32, #tpu.memory_space<vmem>>, vector<4x128xf32>
    tpu.vector_store %arg9[%c0_12, %c0_13], %39 {strides = array<i32>} : memref<4x512xf32, #tpu.memory_space<vmem>>, vector<4x128xf32>,
    %c0_14 = arith.constant 0 : index
    %c384 = arith.constant 384 : index
    %41 = vector.load %arg9[%c0_14, %c384] : memref<4x512xf32, #tpu.memory_space<vmem>>, vector<4x128xf32>
    tpu.vector_store %arg9[%c0_14, %c384], %39 {strides = array<i32>} : memref<4x512xf32, #tpu.memory_space<vmem>>, vector<4x128xf32>,
    %c0_15 = arith.constant 0 : index
    %c128 = arith.constant 128 : index
    %42 = vector.load %arg9[%c0_15, %c128] : memref<4x512xf32, #tpu.memory_space<vmem>>, vector<4x256xf32>
    tpu.vector_store %arg9[%c0_15, %c128], %38 {strides = array<i32>} : memref<4x512xf32, #tpu.memory_space<vmem>>, vector<4x256xf32>,
    %c0_16 = arith.constant 0 : index
    %c0_17 = arith.constant 0 : index
    %c0_18 = arith.constant 0 : index
    %43 = vector.load %arg6[%c0_16, %c0_17, %c0_18] : memref<9x4x4xf32, #tpu.memory_space<vmem>>, vector<9x4x4xf32>
    %c0_19 = arith.constant 0 : index
    %c0_20 = arith.constant 0 : index
    %44 = vector.load %arg7[%c0_19, %c0_20] : memref<3x256xf32, #tpu.memory_space<vmem>>, vector<3x256xf32>
    %c0_21 = arith.constant 0 : index
    %c111 = arith.constant 111 : index
    %45 = vector.load %arg9[%c0_21, %c111] : memref<4x512xf32, #tpu.memory_space<vmem>>, vector<4x256xf32>
    %46 = vector.extract_strided_slice %43 {offsets = [0, 0, 0], sizes = [1, 4, 4], strides = [1, 1, 1]} : vector<9x4x4xf32> to vector<1x4x4xf32>
    %47 = vector.shape_cast %46 : vector<1x4x4xf32> to vector<4x4xf32>
    %48 = vector.extract_strided_slice %47 {offsets = [0, 0], sizes = [4, 1], strides = [1, 1]} : vector<4x4xf32> to vector<4x1xf32>
    %49 = vector.extract_strided_slice %45 {offsets = [0, 0], sizes = [1, 256], strides = [1, 1]} : vector<4x256xf32> to vector<1x256xf32>
    %50 = vector.broadcast %48 : vector<4x1xf32> to vector<4x256xf32>
    %51 = vector.broadcast %49 : vector<1x256xf32> to vector<4x256xf32>
    %52 = arith.mulf %50, %51 : vector<4x256xf32>
    %53 = vector.extract_strided_slice %47 {offsets = [0, 1], sizes = [4, 1], strides = [1, 1]} : vector<4x4xf32> to vector<4x1xf32>
    %54 = vector.extract_strided_slice %45 {offsets = [1, 0], sizes = [1, 256], strides = [1, 1]} : vector<4x256xf32> to vector<1x256xf32>
    %55 = vector.broadcast %53 : vector<4x1xf32> to vector<4x256xf32>
    %56 = vector.broadcast %54 : vector<1x256xf32> to vector<4x256xf32>
    %57 = arith.mulf %55, %56 : vector<4x256xf32>
    %58 = arith.addf %52, %57 : vector<4x256xf32>
    %59 = vector.extract_strided_slice %47 {offsets = [0, 2], sizes = [4, 1], strides = [1, 1]} : vector<4x4xf32> to vector<4x1xf32>
    %60 = vector.extract_strided_slice %45 {offsets = [2, 0], sizes = [1, 256], strides = [1, 1]} : vector<4x256xf32> to vector<1x256xf32>
    %61 = vector.broadcast %59 : vector<4x1xf32> to vector<4x256xf32>
    %62 = vector.broadcast %60 : vector<1x256xf32> to vector<4x256xf32>
    %63 = arith.mulf %61, %62 : vector<4x256xf32>
    %64 = arith.addf %58, %63 : vector<4x256xf32>
    %65 = vector.extract_strided_slice %47 {offsets = [0, 3], sizes = [4, 1], strides = [1, 1]} : vector<4x4xf32> to vector<4x1xf32>
    %66 = vector.extract_strided_slice %45 {offsets = [3, 0], sizes = [1, 256], strides = [1, 1]} : vector<4x256xf32> to vector<1x256xf32>
    %67 = vector.broadcast %65 : vector<4x1xf32> to vector<4x256xf32>
    %68 = vector.broadcast %66 : vector<1x256xf32> to vector<4x256xf32>
    %69 = arith.mulf %67, %68 : vector<4x256xf32>
    %70 = arith.addf %64, %69 : vector<4x256xf32>
    %c0_22 = arith.constant 0 : index
    %c127 = arith.constant 127 : index
    %71 = vector.load %arg9[%c0_22, %c127] : memref<4x512xf32, #tpu.memory_space<vmem>>, vector<4x256xf32>
    %72 = vector.extract_strided_slice %43 {offsets = [3, 0, 0], sizes = [1, 4, 4], strides = [1, 1, 1]} : vector<9x4x4xf32> to vector<1x4x4xf32>
    %73 = vector.shape_cast %72 : vector<1x4x4xf32> to vector<4x4xf32>
    %74 = vector.extract_strided_slice %73 {offsets = [0, 0], sizes = [4, 1], strides = [1, 1]} : vector<4x4xf32> to vector<4x1xf32>
    %75 = vector.extract_strided_slice %71 {offsets = [0, 0], sizes = [1, 256], strides = [1, 1]} : vector<4x256xf32> to vector<1x256xf32>
    %76 = vector.broadcast %74 : vector<4x1xf32> to vector<4x256xf32>
    %77 = vector.broadcast %75 : vector<1x256xf32> to vector<4x256xf32>
    %78 = arith.mulf %76, %77 : vector<4x256xf32>
    %79 = vector.extract_strided_slice %73 {offsets = [0, 1], sizes = [4, 1], strides = [1, 1]} : vector<4x4xf32> to vector<4x1xf32>
    %80 = vector.extract_strided_slice %71 {offsets = [1, 0], sizes = [1, 256], strides = [1, 1]} : vector<4x256xf32> to vector<1x256xf32>
    %81 = vector.broadcast %79 : vector<4x1xf32> to vector<4x256xf32>
    %82 = vector.broadcast %80 : vector<1x256xf32> to vector<4x256xf32>
    %83 = arith.mulf %81, %82 : vector<4x256xf32>
    %84 = arith.addf %78, %83 : vector<4x256xf32>
    %85 = vector.extract_strided_slice %73 {offsets = [0, 2], sizes = [4, 1], strides = [1, 1]} : vector<4x4xf32> to vector<4x1xf32>
    %86 = vector.extract_strided_slice %71 {offsets = [2, 0], sizes = [1, 256], strides = [1, 1]} : vector<4x256xf32> to vector<1x256xf32>
    %87 = vector.broadcast %85 : vector<4x1xf32> to vector<4x256xf32>
    %88 = vector.broadcast %86 : vector<1x256xf32> to vector<4x256xf32>
    %89 = arith.mulf %87, %88 : vector<4x256xf32>
    %90 = arith.addf %84, %89 : vector<4x256xf32>
    %91 = vector.extract_strided_slice %73 {offsets = [0, 3], sizes = [4, 1], strides = [1, 1]} : vector<4x4xf32> to vector<4x1xf32>
    %92 = vector.extract_strided_slice %71 {offsets = [3, 0], sizes = [1, 256], strides = [1, 1]} : vector<4x256xf32> to vector<1x256xf32>
    %93 = vector.broadcast %91 : vector<4x1xf32> to vector<4x256xf32>
    %94 = vector.broadcast %92 : vector<1x256xf32> to vector<4x256xf32>
    %95 = arith.mulf %93, %94 : vector<4x256xf32>
    %96 = arith.addf %90, %95 : vector<4x256xf32>
    %97 = arith.addf %70, %96 : vector<4x256xf32>
    %c0_23 = arith.constant 0 : index
    %c143 = arith.constant 143 : index
    %98 = vector.load %arg9[%c0_23, %c143] : memref<4x512xf32, #tpu.memory_space<vmem>>, vector<4x256xf32>
    %99 = vector.extract_strided_slice %43 {offsets = [6, 0, 0], sizes = [1, 4, 4], strides = [1, 1, 1]} : vector<9x4x4xf32> to vector<1x4x4xf32>
    %100 = vector.shape_cast %99 : vector<1x4x4xf32> to vector<4x4xf32>
    %101 = vector.extract_strided_slice %100 {offsets = [0, 0], sizes = [4, 1], strides = [1, 1]} : vector<4x4xf32> to vector<4x1xf32>
    %102 = vector.extract_strided_slice %98 {offsets = [0, 0], sizes = [1, 256], strides = [1, 1]} : vector<4x256xf32> to vector<1x256xf32>
    %103 = vector.broadcast %101 : vector<4x1xf32> to vector<4x256xf32>
    %104 = vector.broadcast %102 : vector<1x256xf32> to vector<4x256xf32>
    %105 = arith.mulf %103, %104 : vector<4x256xf32>
    %106 = vector.extract_strided_slice %100 {offsets = [0, 1], sizes = [4, 1], strides = [1, 1]} : vector<4x4xf32> to vector<4x1xf32>
    %107 = vector.extract_strided_slice %98 {offsets = [1, 0], sizes = [1, 256], strides = [1, 1]} : vector<4x256xf32> to vector<1x256xf32>
    %108 = vector.broadcast %106 : vector<4x1xf32> to vector<4x256xf32>
    %109 = vector.broadcast %107 : vector<1x256xf32> to vector<4x256xf32>
    %110 = arith.mulf %108, %109 : vector<4x256xf32>
    %111 = arith.addf %105, %110 : vector<4x256xf32>
    %112 = vector.extract_strided_slice %100 {offsets = [0, 2], sizes = [4, 1], strides = [1, 1]} : vector<4x4xf32> to vector<4x1xf32>
    %113 = vector.extract_strided_slice %98 {offsets = [2, 0], sizes = [1, 256], strides = [1, 1]} : vector<4x256xf32> to vector<1x256xf32>
    %114 = vector.broadcast %112 : vector<4x1xf32> to vector<4x256xf32>
    %115 = vector.broadcast %113 : vector<1x256xf32> to vector<4x256xf32>
    %116 = arith.mulf %114, %115 : vector<4x256xf32>
    %117 = arith.addf %111, %116 : vector<4x256xf32>
    %118 = vector.extract_strided_slice %100 {offsets = [0, 3], sizes = [4, 1], strides = [1, 1]} : vector<4x4xf32> to vector<4x1xf32>
    %119 = vector.extract_strided_slice %98 {offsets = [3, 0], sizes = [1, 256], strides = [1, 1]} : vector<4x256xf32> to vector<1x256xf32>
    %120 = vector.broadcast %118 : vector<4x1xf32> to vector<4x256xf32>
    %121 = vector.broadcast %119 : vector<1x256xf32> to vector<4x256xf32>
    %122 = arith.mulf %120, %121 : vector<4x256xf32>
    %123 = arith.addf %117, %122 : vector<4x256xf32>
    %124 = arith.addf %97, %123 : vector<4x256xf32>
    %125 = vector.extract_strided_slice %44 {offsets = [0, 0], sizes = [1, 256], strides = [1, 1]} : vector<3x256xf32> to vector<1x256xf32>
    %126 = vector.broadcast %125 : vector<1x256xf32> to vector<4x256xf32>
    %127 = arith.mulf %124, %126 : vector<4x256xf32>
    %c0_24 = arith.constant 0 : index
    %c112 = arith.constant 112 : index
    %128 = vector.load %arg9[%c0_24, %c112] : memref<4x512xf32, #tpu.memory_space<vmem>>, vector<4x256xf32>
    %129 = vector.extract_strided_slice %43 {offsets = [1, 0, 0], sizes = [1, 4, 4], strides = [1, 1, 1]} : vector<9x4x4xf32> to vector<1x4x4xf32>
    %130 = vector.shape_cast %129 : vector<1x4x4xf32> to vector<4x4xf32>
    %131 = vector.extract_strided_slice %130 {offsets = [0, 0], sizes = [4, 1], strides = [1, 1]} : vector<4x4xf32> to vector<4x1xf32>
    %132 = vector.extract_strided_slice %128 {offsets = [0, 0], sizes = [1, 256], strides = [1, 1]} : vector<4x256xf32> to vector<1x256xf32>
    %133 = vector.broadcast %131 : vector<4x1xf32> to vector<4x256xf32>
    %134 = vector.broadcast %132 : vector<1x256xf32> to vector<4x256xf32>
    %135 = arith.mulf %133, %134 : vector<4x256xf32>
    %136 = vector.extract_strided_slice %130 {offsets = [0, 1], sizes = [4, 1], strides = [1, 1]} : vector<4x4xf32> to vector<4x1xf32>
    %137 = vector.extract_strided_slice %128 {offsets = [1, 0], sizes = [1, 256], strides = [1, 1]} : vector<4x256xf32> to vector<1x256xf32>
    %138 = vector.broadcast %136 : vector<4x1xf32> to vector<4x256xf32>
    %139 = vector.broadcast %137 : vector<1x256xf32> to vector<4x256xf32>
    %140 = arith.mulf %138, %139 : vector<4x256xf32>
    %141 = arith.addf %135, %140 : vector<4x256xf32>
    %142 = vector.extract_strided_slice %130 {offsets = [0, 2], sizes = [4, 1], strides = [1, 1]} : vector<4x4xf32> to vector<4x1xf32>
    %143 = vector.extract_strided_slice %128 {offsets = [2, 0], sizes = [1, 256], strides = [1, 1]} : vector<4x256xf32> to vector<1x256xf32>
    %144 = vector.broadcast %142 : vector<4x1xf32> to vector<4x256xf32>
    %145 = vector.broadcast %143 : vector<1x256xf32> to vector<4x256xf32>
    %146 = arith.mulf %144, %145 : vector<4x256xf32>
    %147 = arith.addf %141, %146 : vector<4x256xf32>
    %148 = vector.extract_strided_slice %130 {offsets = [0, 3], sizes = [4, 1], strides = [1, 1]} : vector<4x4xf32> to vector<4x1xf32>
    %149 = vector.extract_strided_slice %128 {offsets = [3, 0], sizes = [1, 256], strides = [1, 1]} : vector<4x256xf32> to vector<1x256xf32>
    %150 = vector.broadcast %148 : vector<4x1xf32> to vector<4x256xf32>
    %151 = vector.broadcast %149 : vector<1x256xf32> to vector<4x256xf32>
    %152 = arith.mulf %150, %151 : vector<4x256xf32>
    %153 = arith.addf %147, %152 : vector<4x256xf32>
    %c0_25 = arith.constant 0 : index
    %c128_26 = arith.constant 128 : index
    %154 = vector.load %arg9[%c0_25, %c128_26] : memref<4x512xf32, #tpu.memory_space<vmem>>, vector<4x256xf32>
    %155 = vector.extract_strided_slice %43 {offsets = [4, 0, 0], sizes = [1, 4, 4], strides = [1, 1, 1]} : vector<9x4x4xf32> to vector<1x4x4xf32>
    %156 = vector.shape_cast %155 : vector<1x4x4xf32> to vector<4x4xf32>
    %157 = vector.extract_strided_slice %156 {offsets = [0, 0], sizes = [4, 1], strides = [1, 1]} : vector<4x4xf32> to vector<4x1xf32>
    %158 = vector.extract_strided_slice %154 {offsets = [0, 0], sizes = [1, 256], strides = [1, 1]} : vector<4x256xf32> to vector<1x256xf32>
    %159 = vector.broadcast %157 : vector<4x1xf32> to vector<4x256xf32>
    %160 = vector.broadcast %158 : vector<1x256xf32> to vector<4x256xf32>
    %161 = arith.mulf %159, %160 : vector<4x256xf32>
    %162 = vector.extract_strided_slice %156 {offsets = [0, 1], sizes = [4, 1], strides = [1, 1]} : vector<4x4xf32> to vector<4x1xf32>
    %163 = vector.extract_strided_slice %154 {offsets = [1, 0], sizes = [1, 256], strides = [1, 1]} : vector<4x256xf32> to vector<1x256xf32>
    %164 = vector.broadcast %162 : vector<4x1xf32> to vector<4x256xf32>
    %165 = vector.broadcast %163 : vector<1x256xf32> to vector<4x256xf32>
    %166 = arith.mulf %164, %165 : vector<4x256xf32>
    %167 = arith.addf %161, %166 : vector<4x256xf32>
    %168 = vector.extract_strided_slice %156 {offsets = [0, 2], sizes = [4, 1], strides = [1, 1]} : vector<4x4xf32> to vector<4x1xf32>
    %169 = vector.extract_strided_slice %154 {offsets = [2, 0], sizes = [1, 256], strides = [1, 1]} : vector<4x256xf32> to vector<1x256xf32>
    %170 = vector.broadcast %168 : vector<4x1xf32> to vector<4x256xf32>
    %171 = vector.broadcast %169 : vector<1x256xf32> to vector<4x256xf32>
    %172 = arith.mulf %170, %171 : vector<4x256xf32>
    %173 = arith.addf %167, %172 : vector<4x256xf32>
    %174 = vector.extract_strided_slice %156 {offsets = [0, 3], sizes = [4, 1], strides = [1, 1]} : vector<4x4xf32> to vector<4x1xf32>
    %175 = vector.extract_strided_slice %154 {offsets = [3, 0], sizes = [1, 256], strides = [1, 1]} : vector<4x256xf32> to vector<1x256xf32>
    %176 = vector.broadcast %174 : vector<4x1xf32> to vector<4x256xf32>
    %177 = vector.broadcast %175 : vector<1x256xf32> to vector<4x256xf32>
    %178 = arith.mulf %176, %177 : vector<4x256xf32>
    %179 = arith.addf %173, %178 : vector<4x256xf32>
    %180 = arith.addf %153, %179 : vector<4x256xf32>
    %c0_27 = arith.constant 0 : index
    %c144 = arith.constant 144 : index
    %181 = vector.load %arg9[%c0_27, %c144] : memref<4x512xf32, #tpu.memory_space<vmem>>, vector<4x256xf32>
    %182 = vector.extract_strided_slice %43 {offsets = [7, 0, 0], sizes = [1, 4, 4], strides = [1, 1, 1]} : vector<9x4x4xf32> to vector<1x4x4xf32>
    %183 = vector.shape_cast %182 : vector<1x4x4xf32> to vector<4x4xf32>
    %184 = vector.extract_strided_slice %183 {offsets = [0, 0], sizes = [4, 1], strides = [1, 1]} : vector<4x4xf32> to vector<4x1xf32>
    %185 = vector.extract_strided_slice %181 {offsets = [0, 0], sizes = [1, 256], strides = [1, 1]} : vector<4x256xf32> to vector<1x256xf32>
    %186 = vector.broadcast %184 : vector<4x1xf32> to vector<4x256xf32>
    %187 = vector.broadcast %185 : vector<1x256xf32> to vector<4x256xf32>
    %188 = arith.mulf %186, %187 : vector<4x256xf32>
    %189 = vector.extract_strided_slice %183 {offsets = [0, 1], sizes = [4, 1], strides = [1, 1]} : vector<4x4xf32> to vector<4x1xf32>
    %190 = vector.extract_strided_slice %181 {offsets = [1, 0], sizes = [1, 256], strides = [1, 1]} : vector<4x256xf32> to vector<1x256xf32>
    %191 = vector.broadcast %189 : vector<4x1xf32> to vector<4x256xf32>
    %192 = vector.broadcast %190 : vector<1x256xf32> to vector<4x256xf32>
    %193 = arith.mulf %191, %192 : vector<4x256xf32>
    %194 = arith.addf %188, %193 : vector<4x256xf32>
    %195 = vector.extract_strided_slice %183 {offsets = [0, 2], sizes = [4, 1], strides = [1, 1]} : vector<4x4xf32> to vector<4x1xf32>
    %196 = vector.extract_strided_slice %181 {offsets = [2, 0], sizes = [1, 256], strides = [1, 1]} : vector<4x256xf32> to vector<1x256xf32>
    %197 = vector.broadcast %195 : vector<4x1xf32> to vector<4x256xf32>
    %198 = vector.broadcast %196 : vector<1x256xf32> to vector<4x256xf32>
    %199 = arith.mulf %197, %198 : vector<4x256xf32>
    %200 = arith.addf %194, %199 : vector<4x256xf32>
    %201 = vector.extract_strided_slice %183 {offsets = [0, 3], sizes = [4, 1], strides = [1, 1]} : vector<4x4xf32> to vector<4x1xf32>
    %202 = vector.extract_strided_slice %181 {offsets = [3, 0], sizes = [1, 256], strides = [1, 1]} : vector<4x256xf32> to vector<1x256xf32>
    %203 = vector.broadcast %201 : vector<4x1xf32> to vector<4x256xf32>
    %204 = vector.broadcast %202 : vector<1x256xf32> to vector<4x256xf32>
    %205 = arith.mulf %203, %204 : vector<4x256xf32>
    %206 = arith.addf %200, %205 : vector<4x256xf32>
    %207 = arith.addf %180, %206 : vector<4x256xf32>
    %208 = vector.extract_strided_slice %44 {offsets = [1, 0], sizes = [1, 256], strides = [1, 1]} : vector<3x256xf32> to vector<1x256xf32>
    %209 = vector.broadcast %208 : vector<1x256xf32> to vector<4x256xf32>
    %210 = arith.mulf %207, %209 : vector<4x256xf32>
    %211 = arith.addf %127, %210 : vector<4x256xf32>
    %c0_28 = arith.constant 0 : index
    %c113 = arith.constant 113 : index
    %212 = vector.load %arg9[%c0_28, %c113] : memref<4x512xf32, #tpu.memory_space<vmem>>, vector<4x256xf32>
    %213 = vector.extract_strided_slice %43 {offsets = [2, 0, 0], sizes = [1, 4, 4], strides = [1, 1, 1]} : vector<9x4x4xf32> to vector<1x4x4xf32>
    %214 = vector.shape_cast %213 : vector<1x4x4xf32> to vector<4x4xf32>
    %215 = vector.extract_strided_slice %214 {offsets = [0, 0], sizes = [4, 1], strides = [1, 1]} : vector<4x4xf32> to vector<4x1xf32>
    %216 = vector.extract_strided_slice %212 {offsets = [0, 0], sizes = [1, 256], strides = [1, 1]} : vector<4x256xf32> to vector<1x256xf32>
    %217 = vector.broadcast %215 : vector<4x1xf32> to vector<4x256xf32>
    %218 = vector.broadcast %216 : vector<1x256xf32> to vector<4x256xf32>
    %219 = arith.mulf %217, %218 : vector<4x256xf32>
    %220 = vector.extract_strided_slice %214 {offsets = [0, 1], sizes = [4, 1], strides = [1, 1]} : vector<4x4xf32> to vector<4x1xf32>
    %221 = vector.extract_strided_slice %212 {offsets = [1, 0], sizes = [1, 256], strides = [1, 1]} : vector<4x256xf32> to vector<1x256xf32>
    %222 = vector.broadcast %220 : vector<4x1xf32> to vector<4x256xf32>
    %223 = vector.broadcast %221 : vector<1x256xf32> to vector<4x256xf32>
    %224 = arith.mulf %222, %223 : vector<4x256xf32>
    %225 = arith.addf %219, %224 : vector<4x256xf32>
    %226 = vector.extract_strided_slice %214 {offsets = [0, 2], sizes = [4, 1], strides = [1, 1]} : vector<4x4xf32> to vector<4x1xf32>
    %227 = vector.extract_strided_slice %212 {offsets = [2, 0], sizes = [1, 256], strides = [1, 1]} : vector<4x256xf32> to vector<1x256xf32>
    %228 = vector.broadcast %226 : vector<4x1xf32> to vector<4x256xf32>
    %229 = vector.broadcast %227 : vector<1x256xf32> to vector<4x256xf32>
    %230 = arith.mulf %228, %229 : vector<4x256xf32>
    %231 = arith.addf %225, %230 : vector<4x256xf32>
    %232 = vector.extract_strided_slice %214 {offsets = [0, 3], sizes = [4, 1], strides = [1, 1]} : vector<4x4xf32> to vector<4x1xf32>
    %233 = vector.extract_strided_slice %212 {offsets = [3, 0], sizes = [1, 256], strides = [1, 1]} : vector<4x256xf32> to vector<1x256xf32>
    %234 = vector.broadcast %232 : vector<4x1xf32> to vector<4x256xf32>
    %235 = vector.broadcast %233 : vector<1x256xf32> to vector<4x256xf32>
    %236 = arith.mulf %234, %235 : vector<4x256xf32>
    %237 = arith.addf %231, %236 : vector<4x256xf32>
    %c0_29 = arith.constant 0 : index
    %c129 = arith.constant 129 : index
    %238 = vector.load %arg9[%c0_29, %c129] : memref<4x512xf32, #tpu.memory_space<vmem>>, vector<4x256xf32>
    %239 = vector.extract_strided_slice %43 {offsets = [5, 0, 0], sizes = [1, 4, 4], strides = [1, 1, 1]} : vector<9x4x4xf32> to vector<1x4x4xf32>
    %240 = vector.shape_cast %239 : vector<1x4x4xf32> to vector<4x4xf32>
    %241 = vector.extract_strided_slice %240 {offsets = [0, 0], sizes = [4, 1], strides = [1, 1]} : vector<4x4xf32> to vector<4x1xf32>
    %242 = vector.extract_strided_slice %238 {offsets = [0, 0], sizes = [1, 256], strides = [1, 1]} : vector<4x256xf32> to vector<1x256xf32>
    %243 = vector.broadcast %241 : vector<4x1xf32> to vector<4x256xf32>
    %244 = vector.broadcast %242 : vector<1x256xf32> to vector<4x256xf32>
    %245 = arith.mulf %243, %244 : vector<4x256xf32>
    %246 = vector.extract_strided_slice %240 {offsets = [0, 1], sizes = [4, 1], strides = [1, 1]} : vector<4x4xf32> to vector<4x1xf32>
    %247 = vector.extract_strided_slice %238 {offsets = [1, 0], sizes = [1, 256], strides = [1, 1]} : vector<4x256xf32> to vector<1x256xf32>
    %248 = vector.broadcast %246 : vector<4x1xf32> to vector<4x256xf32>
    %249 = vector.broadcast %247 : vector<1x256xf32> to vector<4x256xf32>
    %250 = arith.mulf %248, %249 : vector<4x256xf32>
    %251 = arith.addf %245, %250 : vector<4x256xf32>
    %252 = vector.extract_strided_slice %240 {offsets = [0, 2], sizes = [4, 1], strides = [1, 1]} : vector<4x4xf32> to vector<4x1xf32>
    %253 = vector.extract_strided_slice %238 {offsets = [2, 0], sizes = [1, 256], strides = [1, 1]} : vector<4x256xf32> to vector<1x256xf32>
    %254 = vector.broadcast %252 : vector<4x1xf32> to vector<4x256xf32>
    %255 = vector.broadcast %253 : vector<1x256xf32> to vector<4x256xf32>
    %256 = arith.mulf %254, %255 : vector<4x256xf32>
    %257 = arith.addf %251, %256 : vector<4x256xf32>
    %258 = vector.extract_strided_slice %240 {offsets = [0, 3], sizes = [4, 1], strides = [1, 1]} : vector<4x4xf32> to vector<4x1xf32>
    %259 = vector.extract_strided_slice %238 {offsets = [3, 0], sizes = [1, 256], strides = [1, 1]} : vector<4x256xf32> to vector<1x256xf32>
    %260 = vector.broadcast %258 : vector<4x1xf32> to vector<4x256xf32>
    %261 = vector.broadcast %259 : vector<1x256xf32> to vector<4x256xf32>
    %262 = arith.mulf %260, %261 : vector<4x256xf32>
    %263 = arith.addf %257, %262 : vector<4x256xf32>
    %264 = arith.addf %237, %263 : vector<4x256xf32>
    %c0_30 = arith.constant 0 : index
    %c145 = arith.constant 145 : index
    %265 = vector.load %arg9[%c0_30, %c145] : memref<4x512xf32, #tpu.memory_space<vmem>>, vector<4x256xf32>
    %266 = vector.extract_strided_slice %43 {offsets = [8, 0, 0], sizes = [1, 4, 4], strides = [1, 1, 1]} : vector<9x4x4xf32> to vector<1x4x4xf32>
    %267 = vector.shape_cast %266 : vector<1x4x4xf32> to vector<4x4xf32>
    %268 = vector.extract_strided_slice %267 {offsets = [0, 0], sizes = [4, 1], strides = [1, 1]} : vector<4x4xf32> to vector<4x1xf32>
    %269 = vector.extract_strided_slice %265 {offsets = [0, 0], sizes = [1, 256], strides = [1, 1]} : vector<4x256xf32> to vector<1x256xf32>
    %270 = vector.broadcast %268 : vector<4x1xf32> to vector<4x256xf32>
    %271 = vector.broadcast %269 : vector<1x256xf32> to vector<4x256xf32>
    %272 = arith.mulf %270, %271 : vector<4x256xf32>
    %273 = vector.extract_strided_slice %267 {offsets = [0, 1], sizes = [4, 1], strides = [1, 1]} : vector<4x4xf32> to vector<4x1xf32>
    %274 = vector.extract_strided_slice %265 {offsets = [1, 0], sizes = [1, 256], strides = [1, 1]} : vector<4x256xf32> to vector<1x256xf32>
    %275 = vector.broadcast %273 : vector<4x1xf32> to vector<4x256xf32>
    %276 = vector.broadcast %274 : vector<1x256xf32> to vector<4x256xf32>
    %277 = arith.mulf %275, %276 : vector<4x256xf32>
    %278 = arith.addf %272, %277 : vector<4x256xf32>
    %279 = vector.extract_strided_slice %267 {offsets = [0, 2], sizes = [4, 1], strides = [1, 1]} : vector<4x4xf32> to vector<4x1xf32>
    %280 = vector.extract_strided_slice %265 {offsets = [2, 0], sizes = [1, 256], strides = [1, 1]} : vector<4x256xf32> to vector<1x256xf32>
    %281 = vector.broadcast %279 : vector<4x1xf32> to vector<4x256xf32>
    %282 = vector.broadcast %280 : vector<1x256xf32> to vector<4x256xf32>
    %283 = arith.mulf %281, %282 : vector<4x256xf32>
    %284 = arith.addf %278, %283 : vector<4x256xf32>
    %285 = vector.extract_strided_slice %267 {offsets = [0, 3], sizes = [4, 1], strides = [1, 1]} : vector<4x4xf32> to vector<4x1xf32>
    %286 = vector.extract_strided_slice %265 {offsets = [3, 0], sizes = [1, 256], strides = [1, 1]} : vector<4x256xf32> to vector<1x256xf32>
    %287 = vector.broadcast %285 : vector<4x1xf32> to vector<4x256xf32>
    %288 = vector.broadcast %286 : vector<1x256xf32> to vector<4x256xf32>
    %289 = arith.mulf %287, %288 : vector<4x256xf32>
    %290 = arith.addf %284, %289 : vector<4x256xf32>
    %291 = arith.addf %264, %290 : vector<4x256xf32>
    %292 = vector.extract_strided_slice %44 {offsets = [2, 0], sizes = [1, 256], strides = [1, 1]} : vector<3x256xf32> to vector<1x256xf32>
    %293 = vector.broadcast %292 : vector<1x256xf32> to vector<4x256xf32>
    %294 = arith.mulf %291, %293 : vector<4x256xf32>
    %295 = arith.addf %211, %294 : vector<4x256xf32>
    %cst_31 = arith.constant 1.000000e+00 : f32
    %296 = vector.broadcast %cst_31 : f32 to vector<4x256xf32>
    %297 = arith.mulf %296, %1 : vector<4x256xf32>
    %cst_32 = arith.constant 5.000000e-01 : f32
    %298 = vector.broadcast %cst_32 : f32 to vector<4x256xf32>
    %299 = arith.mulf %298, %295 : vector<4x256xf32>
    %300 = arith.addf %297, %299 : vector<4x256xf32>
    %c0_33 = arith.constant 0 : index
    %c0_34 = arith.constant 0 : index
    %c0_35 = arith.constant 0 : index
    %301 = vector.load %arg8[%c0_33, %c0_34, %c0_35] : memref<1x4x256xf32, #tpu.memory_space<vmem>>, vector<1x4x256xf32>
    %302 = vector.shape_cast %301 : vector<1x4x256xf32> to vector<4x256xf32>
    %303 = vector.shape_cast %300 : vector<4x256xf32> to vector<1x4x256xf32>
    tpu.vector_store %arg8[%c0_33, %c0_34, %c0_35], %303 {strides = array<i32>} : memref<1x4x256xf32, #tpu.memory_space<vmem>>, vector<1x4x256xf32>,
    return
  }
  func.func @transform_0(%arg0: i32) -> (i32, i32, i32) {
    %c0_i32 = arith.constant 0 : i32
    %c0_i32_0 = arith.constant 0 : i32
    %c0_i32_1 = arith.constant 0 : i32
    return %arg0, %c0_i32, %c0_i32_0 : i32, i32, i32
  }
  func.func @transform_1(%arg0: i32) -> (i32, i32) {
    %c0_i32 = arith.constant 0 : i32
    %c0_i32_0 = arith.constant 0 : i32
    %c0_i32_1 = arith.constant 0 : i32
    return %c0_i32, %c0_i32_0 : i32, i32
  }
  func.func @transform_2(%arg0: i32) -> (i32, i32) {
    %c0_i32 = arith.constant 0 : i32
    %c0_i32_0 = arith.constant 0 : i32
    %c0_i32_1 = arith.constant 0 : i32
    return %c0_i32, %c0_i32_0 : i32, i32
  }
  func.func @transform_3(%arg0: i32) -> (i32, i32) {
    %c0_i32 = arith.constant 0 : i32
    %c0_i32_0 = arith.constant 0 : i32
    %c0_i32_1 = arith.constant 0 : i32
    return %c0_i32, %c0_i32_0 : i32, i32
  }
  func.func @transform_4(%arg0: i32) -> (i32, i32) {
    %c0_i32 = arith.constant 0 : i32
    %c0_i32_0 = arith.constant 0 : i32
    %c0_i32_1 = arith.constant 0 : i32
    return %c0_i32, %c0_i32_0 : i32, i32
  }
  func.func @transform_5(%arg0: i32) -> (i32, i32, i32) {
    %c0_i32 = arith.constant 0 : i32
    %c0_i32_0 = arith.constant 0 : i32
    %c0_i32_1 = arith.constant 0 : i32
    %c0_i32_2 = arith.constant 0 : i32
    return %c0_i32, %c0_i32_0, %c0_i32_1 : i32, i32, i32
  }
  func.func @transform_6(%arg0: i32) -> (i32, i32) {
    %c0_i32 = arith.constant 0 : i32
    %c0_i32_0 = arith.constant 0 : i32
    %c0_i32_1 = arith.constant 0 : i32
    return %c0_i32, %c0_i32_0 : i32, i32
  }
  func.func @transform_7(%arg0: i32) -> (i32, i32, i32) {
    %c0_i32 = arith.constant 0 : i32
    %c0_i32_0 = arith.constant 0 : i32
    %c0_i32_1 = arith.constant 0 : i32
    return %arg0, %c0_i32, %c0_i32_0 : i32, i32, i32
  }
}

</mosaic_0001>

<bundles_post_ra>
// kernel: tpu_custom_call.1
= control target key start
LH: loop header
LB: loop body
LE: loop exit
PB: predicated region body
PF: predicated region fallthrough
CT: control target
= control target key end

     0   :  { %12 = vsyncpa [#allocation4], 0  ;;  %s2236_s0 = inlined_call_operand.vmem [shape: f32[2,4,256], index: 0, kind: input, shape index: {}]   ;;  %s2237_s1 = inlined_call_operand.vmem [shape: f32[4,4], index: 1, kind: input, shape index: {}]   ;;  %s2238_s2 = inlined_call_operand.vmem [shape: f32[4,1], index: 2, kind: input, shape index: {}]   ;;  %s2239_s3 = inlined_call_operand.vmem [shape: f32[4,1], index: 3, kind: input, shape index: {}]   ;;  %s2240_s4 = inlined_call_operand.vmem [shape: f32[4,1], index: 4, kind: input, shape index: {}]   ;;  %s2241_s5 = inlined_call_operand.vmem [shape: f32[9,4,4], index: 5, kind: input, shape index: {}]   ;;  %s2242_s6 = inlined_call_operand.vmem [shape: f32[3,256], index: 6, kind: input, shape index: {}]   ;;  %s2243_s7 = inlined_call_operand.hbm [shape: f32[2,4,256], index: 7, kind: output, shape index: {}]  }
   0x1   :  { %14 = vsyncpa [#allocation4 + $0x1], 0  ;;  %s1614_s24 = smov 0   ;;  %s1616_s25 = smov 0  }
   0x2   :  { %s1618_s26 = smov 0   ;;  %s1620_s27 = smov 0  }
   0x3 LB: > { %s1635_s28 = sadd.s32 4294967295, %s1558_s27   ;;  %s1398_s29 = sadd.s32 4294967294, %s1558_s27   ;;  %s1558_s27 = sphi %s1620_s27, %s2249_s27   ;;  %s1554_s26 = sphi %s1618_s26, %s2248_s26   ;;  %s1550_s25 = sphi %s1616_s25, %s2247_s25   ;;  %s1546_s24 = sphi %s1614_s24, %s2246_s24  }
   0x4   : > { %s1639_s30 = sadd.s32 1, %s1558_s27   ;;  %s179_s8 = sadd.s32 1, %s1554_s26 }
   0x5   : > { %s176_s9 = ssub.s32 %s1558_s27, %s1639_s30  ;;  %p189_p0 = scmp.ne.s32.totalorder %s1554_s26, %s1550_s25 }
   0x6   : > { %p177_p1 = scmp.eq.s32.totalorder %s176_s9, 0  ;;  %p190_p2 = scmp.eq.s32.totalorder %s1635_s28, 1 }
   0x7   : > { %p195_p3 = scmp.ne.s32.totalorder %s1550_s25, %s1546_s24  ;;  %p196_p4 = scmp.eq.s32.totalorder %s1398_s29, 1 }
   0x8   : > { %s1650_s10 = scalar_select %p177_p1, %s1554_s26, %s179_s8  }
   0x9   : > { %p1652_p5 = por %p190_p2, %p189_p0  ;;  %p1656_p6 = por %p196_p4, %p195_p3 }
   0xa   : > { %p1401_p7 = scmp.ge.s32.totalorder %s1558_s27, 1  ;;  %p240_p8 = scmp.lt.s32.totalorder %s1558_s27, 3 }
   0xc   : > { %p241_p9 = pnand %p1401_p7, %p240_p8 }
   0xd   : > { %v307_v0 = vld [vmem:[%s2237_s1] sm:$0xf] (!%p241_p9)  ;;  %v1560_v2 = vmov (!%p241_p9), 0   ;;  %v1561_v4 = vmov (!%p241_p9), 1   ;;  %v1562_v5 = vmov (!%p241_p9), 2   ;;  %v1563_v6 = vmov (!%p241_p9), 3  }
   0xe   : > { %244 = sbr.rel (%p241_p9) target bundleno = 610 (0x262), region = 48  ;;  %v278_v1 = vld [vmem:[%s2238_s2] sm:$0xf] (!%p241_p9)  ;;  %1465 = vset.pattern.permute.xlu1 (!%p241_p9), %v1560_v2  ;;  %1464 = vset.pattern.permute.xlu0 (!%p241_p9), %v1560_v2  ;;  %v433_v7 = vld [vmem:[%s2241_s5 + $0x10] sm:$0xf] (!%p241_p9)  ;;  %v1564_v11 = vmov (!%p241_p9), 0.0   ;;  %v286_v15 = vlaneseq (!%p241_p9) }
   0xf   : > { %310 = vperm.xlu1 (!%p241_p9), %1465, %v307_v0   ;;  %281 = vperm.xlu0 (!%p241_p9), %1464, %v278_v1   ;;  %v292_v3 = vld [vmem:[%s2239_s3] sm:$0xf] (!%p241_p9)  ;;  %v436_v9 = vld [vmem:[%s2241_s5 + $0x1c] sm:$0xf] (!%p241_p9)  ;;  %v434_v10 = vld [vmem:[%s2241_s5 + $0x14] sm:$0xf] (!%p241_p9) }
  0x10   : > { %v412_v8 = vld [vmem:[%s2240_s4] sm:$0xf] (!%p241_p9)  ;;  %422 = vst [vmem:[#allocation2] sm:$0xf] (!%p241_p9), %v1564_v11  ;;  %423 = vst [vmem:[#allocation2 + $0xc] sm:$0xf] (!%p241_p9), %v1564_v11 }
  0x11   : > { %v437_v12 = vld [vmem:[%s2241_s5 + $0x20] sm:$0xf] (!%p241_p9)  ;;  %v430_v13 = vld [vmem:[%s2241_s5 + $0x4] sm:$0xf] (!%p241_p9)  ;;  %v435_v14 = vld [vmem:[%s2241_s5 + $0x18] sm:$0xf] (!%p241_p9) }
  0x12   : > { %v287_v16 = vshrl.u32 (!%p241_p9), %v286_v15, 7  ;;  %v432_v17 = vld [vmem:[%s2241_s5 + $0xc] sm:$0xf] (!%p241_p9)  ;;  %v1715_v18 = vld [vmem:[%s2242_s6] sm:$0x77] (!%p241_p9)  ;;  %s1565_s8 = smov (!%p241_p9), 112  }
  0x13   : > { %1466 = vset.pattern.permute.xlu1 (!%p241_p9), %v1561_v4  ;;  %295 = vperm.xlu0 (!%p241_p9), %1464, %v292_v3   ;;  %v431_v21 = vld [vmem:[%s2241_s5 + $0x8] sm:$0xf] (!%p241_p9)  ;;  %p272_p10 = scmp.lt.s32.totalorder (!%p241_p9), %s1635_s28, 1  ;;  %v1566_v26 = vmov (!%p241_p9), 839922192   ;;  %s1567_s17 = smov (!%p241_p9), 96  }
  0x14   : > { %335 = vperm.xlu1 (!%p241_p9), %1466, %v307_v0   ;;  %v1718_v19 = vsub.s32 (!%p241_p9), 5, %v287_v16  ;;  %v1726_v22 = vsub.s32 (!%p241_p9), 1, %v287_v16  ;;  %v284_v27 = vunpack.c.l.s4 (!%p241_p9), %v1566_v26  ;;  %v1753_v39 = vsub.s32 (!%p241_p9), 0, %v287_v16  ;;  %s1568_s18 = smov (!%p241_p9), 113   ;;  %s1569_s21 = smov (!%p241_p9), 111  }
  0x15   : > { %s273_s9 = scalar_select %p272_p10, %s1635_s28, 1  ;;  %v1755_v40 = vsub.s32 4, %v287_v16  ;;  %v1757_v41 = vsub.s32 3, %v287_v16  ;;  %v1759_v42 = vsub.s32 7, %v287_v16  ;;  %v1761_v43 = vsub.s32 2, %v287_v16 }
  0x16   : > { %v1064_v20 = vrot.slane %v1715_v18, %v1718_v19  ;;  %v1060_v24 = vrot.slane %v1715_v18, %v1726_v22  ;;  %v285_v28 = vunpack.c.0.s8 %v284_v27  ;;  %v1763_v44 = vsub.s32 6, %v287_v16  ;;  %s1570_s22 = smov 127   ;;  %s1571_s23 = smov 126  }
  0x17   : > { %1467 = vset.pattern.permute.xlu0 %v1562_v5  ;;  %s1410_s13 = sshll.u32 %s273_s9, 3  ;;  %vm804_vm0 = vcmask 785408   ;;  %vm636_vm1 = vcmask 916480   ;;  %vm1278_vm2 = vcmask 924672   ;;  %vm838_vm3 = vcmask 908288   ;;  %s1572_s29 = smov 17  }
  0x18   : > { %1468 = vset.pattern.permute.xlu1 %v1563_v6  ;;  %361 = vperm.xlu0 %1467, %v307_v0   ;;  %v1074_v23 = vrot.slane %v1064_v20, %v1726_v22  ;;  %v1070_v25 = vrot.slane %v1060_v24, %v1726_v22  ;;  %v288_v29 = vsub.s32 %v285_v28, %v287_v16  ;;  %s276_s16 = scalar_lea.vmem %s2236_s0, %s1410_s13  ;;  %vm1097_vm4 = vcmask 1039360   ;;  %s1411_s13 = sshll.u32 %s1635_s28, 7 }
  0x19   : > { %387 = vperm.xlu1 %1468, %v307_v0   ;;  %v1750_v32 = vld [vmem:[%s276_s16] sm:$0xff]  ;;  %vm1295_vm5 = vcmask 1031168   ;;  %vm1317_vm6 = vcmask 1043456   ;;  %vm1319_vm7 = vcmask 138240   ;;  %s1573_s28 = smov [#allocation3]  }
  0x1c   : > { %1470 = vset.pattern.permute.xlu0 %v1560_v2 }
  0x1d   : > { %1469 = vset.pattern.permute.xlu1 %v1560_v2  ;;  %887 = vperm.xlu0 %1470, %v433_v7  }
  0x1e   : > { %415 = vperm.xlu1 %1469, %v412_v8  }
  0x21   : > { %1004 = vperm.xlu0 %1470, %v436_v9  }
  0x22   : > { %1471 = vset.pattern.permute.xlu1 %v1561_v4 }
  0x23   : > { %912 = vperm.xlu1 %1471, %v433_v7  }
  0x25   : > { %1146 = vperm.xlu0 %1470, %v434_v10  }
  0x27   : > { %1472 = vset.pattern.permute.xlu1 %v1562_v5 }
  0x28   : > { %938 = vperm.xlu1 %1472, %v433_v7  }
  0x29   : > { %1201 = vperm.xlu0 %1470, %v437_v12  }
  0x2c   : > { %1473 = vset.pattern.permute.xlu1 %v1561_v4 }
  0x2d   : > { %1011 = vperm.xlu1 %1473, %v436_v9   ;;  %1475 = vset.pattern.permute.xlu0 %v1563_v6 }
  0x2e   : > { %964 = vperm.xlu0 %1475, %v433_v7  }
  0x31   : > { %1153 = vperm.xlu1 %1473, %v434_v10  }
  0x32   : > { %1173 = vperm.xlu0 %1475, %v434_v10  }
  0x35   : > { %1474 = vset.pattern.permute.xlu1 %v1562_v5 }
  0x36   : > { %1021 = vperm.xlu1 %1474, %v436_v9   ;;  %1482 = vset.pattern.permute.xlu0 %v1561_v4 }
  0x37   : > { %855 = vperm.xlu0 %1482, %v430_v13  }
  0x3a   : > { %1163 = vperm.xlu1 %1474, %v434_v10  }
  0x3b   : > { %685 = vperm.xlu0 %1482, %v435_v14  }
  0x3e   : > { %1476 = vset.pattern.permute.xlu1 %v1561_v4 }
  0x3f   : > { %1208 = vperm.xlu1 %1476, %v437_v12   ;;  %1488 = vset.pattern.permute.xlu0 %v1562_v5 }
  0x40   : > { %722 = vperm.xlu0 %1488, %v435_v14  }
  0x43   : > { %1477 = vset.pattern.permute.xlu1 %v1563_v6 }
  0x44   : > { %1031 = vperm.xlu1 %1477, %v436_v9   ;;  %1490 = vset.pattern.permute.xlu0 %v1563_v6 }
  0x45   : > { %759 = vperm.xlu0 %1490, %v435_v14  }
  0x48   : > { %1478 = vset.pattern.permute.xlu1 %v1562_v5 }
  0x49   : > { %1218 = vperm.xlu1 %1478, %v437_v12   ;;  %1491 = vset.pattern.permute.xlu0 %v1560_v2 }
  0x4a   : > { %591 = vperm.xlu0 %1491, %v432_v17  }
  0x4d   : > { %1479 = vset.pattern.permute.xlu1 %v1563_v6 }
  0x4e   : > { %1228 = vperm.xlu1 %1479, %v437_v12   ;;  %1108 = vperm.xlu0 %1491, %v431_v21  }
  0x52   : > { %1480 = vset.pattern.permute.xlu1 %v1561_v4  ;;  %1079 = vrot.lane.b32.xlu0 %v1074_v23, %s1565_s8 }
  0x53   : > { %598 = vperm.xlu1 %1480, %v432_v17  }
  0x57   : > { %1481 = vset.pattern.permute.xlu1 %v1560_v2 }
  0x58   : > { %848 = vperm.xlu1 %1481, %v430_v13  }
  0x5c   : > { %1483 = vset.pattern.permute.xlu1 %v1562_v5 }
  0x5d   : > { %608 = vperm.xlu1 %1483, %v432_v17  }
  0x61   : > { %1484 = vset.pattern.permute.xlu1 %v1560_v2 }
  0x62   : > { %649 = vperm.xlu1 %1484, %v435_v14  }
  0x66   : > { %1485 = vset.pattern.permute.xlu1 %v1562_v5 }
  0x67   : > { %865 = vperm.xlu1 %1485, %v430_v13  }
  0x6b   : > { %1486 = vset.pattern.permute.xlu1 %v1561_v4 }
  0x6c   : > { %1115 = vperm.xlu1 %1486, %v431_v21  }
  0x70   : > { %1487 = vset.pattern.permute.xlu1 %v1563_v6 }
  0x71   : > { %618 = vperm.xlu1 %1487, %v432_v17  }
  0x75   : > { %875 = vperm.xlu1 %1487, %v430_v13  }
  0x79   : > { %1489 = vset.pattern.permute.xlu1 %v1562_v5 }
  0x7a   : > { %1125 = vperm.xlu1 %1489, %v431_v21  }
  0x7e   : > { %1492 = vset.pattern.permute.xlu1 %v1563_v6 }
  0x7f   : > { %1135 = vperm.xlu1 %1492, %v431_v21  }
  0x83   : > { %1077 = vrot.lane.b32.xlu1 %v1070_v25, %s1565_s8 }
  0x84   : > { %1493 = vset.pattern.permute.xlu1 %v1561_v4 }
  0x8e   : > { %v311_v30 = vpop.permute.xlu1 %310  ;;  %v282_v31 = vpop.permute.xlu0 %281 }
  0x8f   : > { %v289_v33 = vrot.slane %v282_v31, %v288_v29  ;;  %v646_v31 = vld [vmem:[#allocation2 + $0xc] sm:$0xf] }
  0x91   : > { %v291_v34 = vmul.f32 %v289_v33, %v1750_v32 }
  0x92   : > { %v296_v35 = vpop.permute.xlu0 %295 }
  0x93   : > { %v303_v36 = vrot.slane %v296_v35, %v288_v29  ;;  %v336_v37 = vpop.permute.xlu1 %335 }
  0x95   : > { %v305_v38 = vadd.f32 %v303_v36, %v291_v34 }
  0x97   : > { %v306_v45 = vmax.f32 %v305_v38, 0.0  ;;  %v362_v46 = vpop.permute.xlu0 %361  ;;  %v699_v38 = vrot.slane %v646_v31, %v1726_v22 }
  0x98   : > { %v388_v47 = vpop.permute.xlu1 %387 }
  0x99   : > { %v317_v48 = vrot.slane %v306_v45, %v1753_v39  ;;  %v321_v49 = vrot.slane %v306_v45, %v1755_v40  ;;  %v341_v50 = vrot.slane %v306_v45, %v1726_v22  ;;  %v345_v51 = vrot.slane %v306_v45, %v1718_v19 }
  0x9a   : > { %v393_v52 = vrot.slane %v306_v45, %v1757_v41  ;;  %v397_v53 = vrot.slane %v306_v45, %v1759_v42  ;;  %v367_v54 = vrot.slane %v306_v45, %v1761_v43  ;;  %v371_v55 = vrot.slane %v306_v45, %v1763_v44 }
  0x9b   : > { %v327_v56 = vrot.slane %v317_v48, %v1753_v39  ;;  %v331_v57 = vrot.slane %v321_v49, %v1753_v39  ;;  %v351_v58 = vrot.slane %v341_v50, %v1726_v22  ;;  %v355_v59 = vrot.slane %v345_v51, %v1726_v22 }
  0x9c   : > { %v403_v60 = vrot.slane %v393_v52, %v1757_v41  ;;  %v407_v61 = vrot.slane %v397_v53, %v1757_v41  ;;  %v377_v62 = vrot.slane %v367_v54, %v1761_v43  ;;  %v381_v63 = vrot.slane %v371_v55, %v1761_v43  ;;  %v1781_v0 = vpop.permute.xlu0 %887 }
  0x9d   : > { %v332_v1 = vmul.f32 %v327_v56, %v311_v30  ;;  %v333_v2 = vmul.f32 %v331_v57, %v311_v30  ;;  %v356_v3 = vmul.f32 %v351_v58, %v336_v37  ;;  %v357_v4 = vmul.f32 %v355_v59, %v336_v37  ;;  %v416_v7 = vpop.permute.xlu1 %415 }
  0x9e   : > { %v382_v8 = vmul.f32 %v377_v62, %v362_v46  ;;  %v383_v9 = vmul.f32 %v381_v63, %v362_v46  ;;  %v408_v12 = vmul.f32 %v403_v60, %v388_v47  ;;  %v409_v13 = vmul.f32 %v407_v61, %v388_v47 }
  0x9f   : > { %v358_v10 = vadd.f32 %v356_v3, %v332_v1  ;;  %v359_v11 = vadd.f32 %v357_v4, %v333_v2  ;;  %v665_v37 = vrot.slane %v646_v31, %v1753_v39  ;;  %v773_v45 = vrot.slane %v646_v31, %v1757_v41 }
  0xa0   : > { %v1785_v17 = vpop.permute.xlu0 %1004  ;;  %v1821_v51 = vrot.slane %v699_v38, %v1726_v22  ;;  %v736_v52 = vrot.slane %v646_v31, %v1761_v43 }
  0xa1   : > { %v384_v14 = vadd.f32 %v382_v8, %v358_v10  ;;  %v385_v15 = vadd.f32 %v383_v9, %v359_v11  ;;  %v1816_v49 = vrot.slane %v665_v37, %v1753_v39  ;;  %v1827_v54 = vrot.slane %v773_v45, %v1757_v41 }
  0xa2   : > { %v1783_v16 = vpop.permute.xlu1 %912  ;;  %v1843_v61 = vrot.slane %v736_v52, %v1761_v43 }
  0xa3   : > { %v410_v20 = vadd.f32 %v408_v12, %v384_v14  ;;  %v411_v21 = vadd.f32 %v409_v13, %v385_v15  ;;  %v1009_v14 = vmul.f32 %v1785_v17, %v1816_v49 }
  0xa4   : > { %v1789_v28 = vpop.permute.xlu0 %1146 }
  0xa5   : > { %v418_v23 = vadd.f32 %v416_v7, %v410_v20  ;;  %v419_v24 = vadd.f32 %v416_v7, %v411_v21  ;;  %v1151_v57 = vmul.f32 %v1789_v28, %v1816_v49 }
  0xa7   : > { %v420_v25 = vmax.f32 %v418_v23, 0.0  ;;  %v421_v26 = vmax.f32 %v419_v24, 0.0  ;;  %v1787_v27 = vpop.permute.xlu1 %938 }
  0xa8   : > { %v1796_v33 = vpop.permute.xlu0 %1201 }
  0xa9   : > { %v1791_v29 = vcombine.low %v420_v25, %v421_v26 }
  0xab   : > { %428 = vst [vmem:[#allocation2 + $0x4] sm:$0xff] %v1791_v29  ;;  %v898_v34 = vrot.slane %v1791_v29, %v1755_v40  ;;  %v922_v35 = vrot.slane %v1791_v29, %v1718_v19  ;;  %v948_v50 = vrot.slane %v1791_v29, %v1763_v44  ;;  %v974_v60 = vrot.slane %v1791_v29, %v1759_v42 }
  0xac   : > { %v1794_v30 = vpop.permute.xlu1 %1011  ;;  %v894_v63 = vrot.slane %v1791_v29, %v1753_v39  ;;  %v918_v1 = vrot.slane %v1791_v29, %v1726_v22  ;;  %v944_v9 = vrot.slane %v1791_v29, %v1761_v43 }
  0xad   : > { %v1808_v46 = vrot.slane %v898_v34, %v1753_v39  ;;  %v1811_v47 = vrot.slane %v922_v35, %v1726_v22  ;;  %v1813_v48 = vpop.permute.xlu0 %964  ;;  %v1838_v59 = vrot.slane %v948_v50, %v1761_v43  ;;  %v1862_v11 = vrot.slane %v974_v60, %v1757_v41 }
  0xae   : > { %v1016_v20 = vmul.f32 %v1794_v30, %v1821_v51  ;;  %v1875_v23 = vrot.slane %v894_v63, %v1753_v39  ;;  %v1878_v24 = vrot.slane %v918_v1, %v1726_v22  ;;  %v1885_v35 = vrot.slane %v944_v9, %v1761_v43 }
  0xaf   : > { %v910_v55 = vmul.f32 %v1808_v46, %v1781_v0  ;;  %v934_v56 = vmul.f32 %v1811_v47, %v1783_v16  ;;  %v960_v10 = vmul.f32 %v1838_v59, %v1787_v27  ;;  %v1008_v13 = vmul.f32 %v1785_v17, %v1808_v46 }
  0xb0   : > { %v1802_v36 = vpop.permute.xlu1 %1153  ;;  %v1015_v15 = vmul.f32 %v1794_v30, %v1811_v47  ;;  %v986_v37 = vmul.f32 %v1862_v11, %v1813_v48  ;;  %v1019_v50 = vadd.f32 %v1016_v20, %v1009_v14  ;;  %v1149_v52 = vmul.f32 %v1789_v28, %v1875_v23 }
  0xb1   : > { %v1158_v58 = vmul.f32 %v1802_v36, %v1821_v51  ;;  %v1851_v2 = vpop.permute.xlu0 %1173  ;;  %v936_v3 = vadd.f32 %v934_v56, %v910_v55  ;;  %v1156_v38 = vmul.f32 %v1802_v36, %v1878_v24  ;;  %v970_v55 = vrot.slane %v1791_v29, %v1757_v41 }
  0xb2   : > { %v1178_v7 = vmul.f32 %v1851_v2, %v1827_v54  ;;  %v1018_v45 = vadd.f32 %v1015_v15, %v1008_v13 }
  0xb3   : > { %v1161_v4 = vadd.f32 %v1158_v58, %v1151_v57  ;;  %v962_v25 = vadd.f32 %v960_v10, %v936_v3  ;;  %v1906_v29 = vrot.slane %v970_v55, %v1757_v41  ;;  %v909_v10 = vmul.f32 %v1875_v23, %v1781_v0 }
  0xb4   : > { %v1257_v0 = vrot.slane %v1715_v18, %v1761_v43  ;;  %v959_v55 = vmul.f32 %v1885_v35, %v1787_v27  ;;  %v1014_v27 = vmul.f32 %v1794_v30, %v1878_v24 }
  0xb5   : > { %v1824_v53 = vpop.permute.xlu1 %1021  ;;  %v988_v56 = vadd.f32 %v986_v37, %v962_v25  ;;  %v1176_v20 = vmul.f32 %v1851_v2, %v1906_v29  ;;  %v1206_v25 = vmul.f32 %v1796_v33, %v1816_v49 }
  0xb6   : > { %v1025_v31 = vmul.f32 %v1824_v53, %v1838_v59  ;;  %v1026_v34 = vmul.f32 %v1824_v53, %v1843_v61  ;;  %v1024_v30 = vmul.f32 %v1824_v53, %v1885_v35 }
  0xb8   : > { %v1028_v60 = vadd.f32 %v1025_v31, %v1018_v45  ;;  %v1029_v63 = vadd.f32 %v1026_v34, %v1019_v50  ;;  %v1934_v45 = vld [vmem:[#allocation2 + $0x8] sm:$0xf] }
  0xb9   : > { %v1845_v62 = vpop.permute.xlu1 %1163 }
  0xba   : > { %v1168_v8 = vmul.f32 %v1845_v62, %v1843_v61  ;;  %v1166_v57 = vmul.f32 %v1845_v62, %v1885_v35 }
  0xbc   : > { %v1171_v12 = vadd.f32 %v1168_v8, %v1161_v4  ;;  %v1159_v4 = vadd.f32 %v1156_v38, %v1149_v52 }
  0xbe   : > { %v1872_v21 = vpop.permute.xlu1 %1208  ;;  %v1181_v26 = vadd.f32 %v1178_v7, %v1171_v12  ;;  %v1169_v9 = vadd.f32 %v1166_v57, %v1159_v4  ;;  %v933_v12 = vmul.f32 %v1878_v24, %v1783_v16  ;;  %v1205_v16 = vmul.f32 %v1796_v33, %v1808_v46 }
  0xbf   : > { %v1212_v13 = vmul.f32 %v1872_v21, %v1811_v47  ;;  %v1213_v14 = vmul.f32 %v1872_v21, %v1821_v51 }
  0xc0   : > { %1189 = vrot.lane.b32.xlu0 %v1181_v26, %s1565_s8  ;;  %v1928_v26 = vld [vmem:[#allocation2] sm:$0xff]  ;;  %v1179_v37 = vadd.f32 %v1176_v20, %v1169_v9  ;;  %v935_v38 = vadd.f32 %v933_v12, %v909_v10  ;;  %v493_v9 = vrot.slane %v1934_v45, %v1726_v22  ;;  %v1150_v10 = vmul.f32 %v1789_v28, %v1808_v46 }
  0xc1   : > { %v1215_v50 = vadd.f32 %v1212_v13, %v1205_v16  ;;  %v1216_v52 = vadd.f32 %v1213_v14, %v1206_v25  ;;  %v985_v20 = vmul.f32 %v1906_v29, %v1813_v48  ;;  %v451_v16 = vrot.slane %v1928_v26, %v1753_v39 }
  0xc2   : > { %v961_v12 = vadd.f32 %v959_v55, %v935_v38  ;;  %v455_v28 = vrot.slane %v1928_v26, %v1755_v40  ;;  %v459_v25 = vrot.slane %v1934_v45, %v1753_v39 }
  0xc3   : > { %v1898_v58 = vpop.permute.xlu1 %1031 }
  0xc4   : > { %v1035_v1 = vmul.f32 %v1898_v58, %v1862_v11  ;;  %v1036_v3 = vmul.f32 %v1898_v58, %v1827_v54  ;;  %993 = vrot.lane.b32.xlu0 %v988_v56, %s1565_s8  ;;  %v485_v56 = vrot.slane %v1928_v26, %v1726_v22  ;;  %v1034_v38 = vmul.f32 %v1898_v58, %v1906_v29 }
  0xc6   : > { %v1039_v7 = vadd.f32 %v1036_v3, %v1029_v63  ;;  %v1038_v8 = vadd.f32 %v1035_v1, %v1028_v60  ;;  %v1267_v60 = vrot.slane %v1257_v0, %v1761_v43  ;;  %v856_v0 = vpop.permute.xlu0 %855 }
  0xc8   : > { %v1916_v15 = vpop.permute.xlu1 %1218  ;;  %1047 = vrot.lane.b32.xlu1 %v1039_v7, %s1567_s17  ;;  %1045 = vrot.lane.b32.xlu0 %v1038_v8, %s1567_s17  ;;  %v1007_v7 = vmul.f32 %v1785_v17, %v1875_v23  ;;  %v489_v8 = vrot.slane %v1928_v26, %v1718_v19  ;;  %v1157_v17 = vmul.f32 %v1802_v36, %v1811_v47 }
  0xc9   : > { %v1222_v31 = vmul.f32 %v1916_v15, %v1838_v59  ;;  %v1223_v34 = vmul.f32 %v1916_v15, %v1843_v61  ;;  %v1961_v19 = vrot.slane %v485_v56, %v1726_v22  ;;  %v1985_v56 = vrot.slane %v451_v16, %v1753_v39 }
  0xca   : > { %v1017_v36 = vadd.f32 %v1014_v27, %v1007_v7  ;;  %v1974_v53 = vrot.slane %v489_v8, %v1726_v22  ;;  %v2002_v7 = vld [vmem:[%s2241_s5] sm:$0xf]  ;;  %v2004_v27 = vpop.permute.xlu0 %685 }
  0xcb   : > { %v1225_v63 = vadd.f32 %v1222_v31, %v1215_v50  ;;  %v1226_v1 = vadd.f32 %v1223_v34, %v1216_v52  ;;  %v1977_v31 = vrot.slane %v493_v9, %v1726_v22  ;;  %v1167_v34 = vmul.f32 %v1845_v62, %v1838_v59 }
  0xcc   : > { %1185 = vrot.lane.b32.xlu0 %v1179_v37, %s1565_s8  ;;  %v987_v37 = vadd.f32 %v985_v20, %v961_v12  ;;  %v1160_v50 = vadd.f32 %v1157_v17, %v1150_v10  ;;  %v1027_v52 = vadd.f32 %v1024_v30, %v1017_v36  ;;  %v858_v55 = vmul.f32 %v856_v0, %v1961_v19 }
  0xcd   : > { %v1229_v57 = vpop.permute.xlu1 %1228  ;;  %v1991_v22 = vrot.slane %v459_v25, %v1753_v39  ;;  %v859_v62 = vmul.f32 %v856_v0, %v1974_v53  ;;  %v860_v58 = vmul.f32 %v856_v0, %v1977_v31  ;;  %v1204_v12 = vmul.f32 %v1796_v33, %v1875_v23 }
  0xce   : > { %v1232_v3 = vmul.f32 %v1229_v57, %v1862_v11  ;;  %v1233_v4 = vmul.f32 %v1229_v57, %v1827_v54  ;;  %v1037_v10 = vadd.f32 %v1034_v38, %v1027_v52  ;;  %v817_v30 = vrot.slane %v1715_v18, %v1753_v39 }
  0xcf   : > { %v1231_v16 = vmul.f32 %v1229_v57, %v1906_v29  ;;  %v522_v57 = vrot.slane %v1928_v26, %v1761_v43  ;;  %v530_v38 = vrot.slane %v1934_v45, %v1761_v43  ;;  %v717_v52 = vmul.f32 %v1821_v51, %v2004_v27 }
  0xd0   : > { %v1236_v13 = vadd.f32 %v1233_v4, %v1226_v1  ;;  %v1235_v14 = vadd.f32 %v1232_v3, %v1225_v63  ;;  %v1988_v63 = vrot.slane %v455_v28, %v1753_v39  ;;  %v1170_v1 = vadd.f32 %v1167_v34, %v1160_v50 }
  0xd1   : > { %v1211_v3 = vmul.f32 %v1872_v21, %v1878_v24  ;;  %v1177_v21 = vmul.f32 %v1851_v2, %v1862_v11  ;;  %v2022_v2 = vpop.permute.xlu0 %722  ;;  %v827_v36 = vrot.slane %v817_v30, %v1753_v39 }
  0xd2   : > { %v1969_v48 = vpop.permute.xlu1 %598  ;;  %1244 = vrot.lane.b32.xlu1 %v1236_v13, %s1567_s17  ;;  %1242 = vrot.lane.b32.xlu0 %v1235_v14, %s1567_s17  ;;  %v1221_v13 = vmul.f32 %v1916_v15, %v1885_v35  ;;  %v1261_v15 = vrot.slane %v1715_v18, %v1763_v44 }
  0xd3   : > { %v1214_v0 = vadd.f32 %v1211_v3, %v1204_v12  ;;  %v1180_v28 = vadd.f32 %v1177_v21, %v1170_v1  ;;  %v2051_v1 = vrot.slane %v530_v38, %v1761_v43  ;;  %v754_v3 = vmul.f32 %v1843_v61, %v2022_v2 }
  0xd4   : > { %v1271_v50 = vrot.slane %v1261_v15, %v1761_v43  ;;  %v567_v61 = vrot.slane %v1934_v45, %v1757_v41  ;;  %v821_v45 = vrot.slane %v1715_v18, %v1755_v40  ;;  %v563_v18 = vrot.slane %v1928_v26, %v1759_v42 }
  0xd5   : > { %v1224_v25 = vadd.f32 %v1221_v13, %v1214_v0  ;;  %v603_v13 = vmul.f32 %v1969_v48, %v1977_v31  ;;  %v602_v42 = vmul.f32 %v1969_v48, %v1974_v53 }
  0xd6   : > { %991 = vrot.lane.b32.xlu1 %v987_v37, %s1565_s8  ;;  %1274 = vrot.lane.b32.xlu0 %v1267_v60, %s1568_s18  ;;  %v526_v37 = vrot.slane %v1928_v26, %v1763_v44  ;;  %v2045_v44 = vrot.slane %v522_v57, %v1761_v43 }
  0xd7   : > { %v849_v4 = vpop.permute.xlu1 %848  ;;  %v1234_v34 = vadd.f32 %v1231_v16, %v1224_v25  ;;  %v2087_v25 = vrot.slane %v567_v61, %v1757_v41 }
  0xd8   : > { %v851_v8 = vmul.f32 %v849_v4, %v1985_v56  ;;  %v852_v60 = vmul.f32 %v849_v4, %v1988_v63  ;;  %v853_v9 = vmul.f32 %v849_v4, %v1991_v22 }
  0xda   : > { %v861_v14 = vadd.f32 %v858_v55, %v851_v8  ;;  %v862_v20 = vadd.f32 %v859_v62, %v852_v60  ;;  %v863_v17 = vadd.f32 %v860_v58, %v853_v9  ;;  %443 = vperm.xlu0 %1491, %v2002_v7   ;;  %1043 = vrot.lane.b32.xlu1 %v1037_v10, %s1567_s17  ;;  %v2042_v62 = vpop.permute.xlu0 %759 }
  0xdb   : > { %v2048_v58 = vrot.slane %v526_v37, %v1761_v43  ;;  %v791_v21 = vmul.f32 %v1827_v54, %v2042_v62  ;;  %v559_v54 = vrot.slane %v1928_v26, %v1757_v41 }
  0xdc   : > { %v2020_v33 = vpop.permute.xlu1 %608 }
  0xdd   : > { %v613_v16 = vmul.f32 %v2020_v33, %v2051_v1  ;;  %v2097_v40 = vrot.slane %v559_v54, %v1757_v41  ;;  %v611_v38 = vmul.f32 %v2020_v33, %v2045_v44 }
  0xde   : > { %1495 = vset.pattern.permute.xlu0 %v1563_v6  ;;  %1187 = vrot.lane.b32.xlu1 %v1180_v28, %s1565_s8  ;;  %v592_v43 = vpop.permute.xlu0 %591 }
  0xdf   : > { %553 = vperm.xlu0 %1495, %v2002_v7   ;;  %v596_v0 = vmul.f32 %v592_v43, %v1991_v22  ;;  %v594_v37 = vmul.f32 %v592_v43, %v1985_v56 }
  0xe1   : > { %v650_v6 = vpop.permute.xlu1 %649 }
  0xe2   : > { %1240 = vrot.lane.b32.xlu1 %v1234_v34, %s1567_s17  ;;  %v683_v55 = vmul.f32 %v1816_v49, %v650_v6  ;;  %v682_v30 = vmul.f32 %v1808_v46, %v650_v6  ;;  %v606_v46 = vadd.f32 %v603_v13, %v596_v0  ;;  %v1109_v13 = vpop.permute.xlu0 %1108 }
  0xe3   : > { %834 = vrot.lane.b32.xlu0 %v827_v36, %s1569_s21  ;;  %v753_v36 = vmul.f32 %v1838_v59, %v2022_v2 }
  0xe4   : > { %v720_v49 = vadd.f32 %v717_v52, %v683_v55  ;;  %v616_v34 = vadd.f32 %v613_v16, %v606_v46  ;;  %v790_v52 = vmul.f32 %v1862_v11, %v2042_v62  ;;  %v681_v55 = vmul.f32 %v1875_v23, %v650_v6 }
  0xe5   : > { %v612_v11 = vmul.f32 %v2020_v33, %v2048_v58  ;;  %v789_v33 = vmul.f32 %v1906_v29, %v2042_v62 }
  0xe6   : > { %v866_v51 = vpop.permute.xlu1 %865  ;;  %1276 = vrot.lane.b32.xlu1 %v1271_v50, %s1568_s18  ;;  %s2194_s18 = scalar_lea.hbm %s2243_s7, %s1411_s13 }
  0xe7   : > { %v868_v4 = vmul.f32 %v866_v51, %v2045_v44  ;;  %v869_v8 = vmul.f32 %v866_v51, %v2048_v58  ;;  %v870_v60 = vmul.f32 %v866_v51, %v2051_v1  ;;  %v2114_v51 = vrot.slane %v563_v18, %v1757_v41 }
  0xe8   : > { %v752_v41 = vmul.f32 %v1885_v35, %v2022_v2 }
  0xe9   : > { %v2059_v9 = vadd.f32 %v868_v4, %v861_v14  ;;  %v2061_v10 = vadd.f32 %v869_v8, %v862_v20  ;;  %v2063_v12 = vadd.f32 %v870_v60, %v863_v17  ;;  %v757_v20 = vadd.f32 %v754_v3, %v720_v49 }
  0xea   : > { %479 = vperm.xlu1 %1493, %v2002_v7   ;;  %v716_v17 = vmul.f32 %v1811_v47, %v2004_v27  ;;  %v715_v3 = vmul.f32 %v1878_v24, %v2004_v27  ;;  %v595_v49 = vmul.f32 %v592_v43, %v1988_v63 }
  0xeb   : > { %v2073_v14 = vpop.permute.xlu1 %1115  ;;  %v794_v47 = vadd.f32 %v791_v21, %v757_v20  ;;  %v2129_v20 = vpop.permute.xlu0 %1079 }
  0xec   : > { %v719_v28 = vadd.f32 %v716_v17, %v682_v30  ;;  %v605_v23 = vadd.f32 %v602_v42, %v595_v49  ;;  %v718_v6 = vadd.f32 %v715_v3, %v681_v55  ;;  %v1120_v42 = vmul.f32 %v2073_v14, %v1977_v31 }
  0xed   : > { %v1113_v49 = vmul.f32 %v1109_v13, %v1991_v22 }
  0xee   : > { %1494 = vset.pattern.permute.xlu1 %v1562_v5  ;;  %v601_v5 = vmul.f32 %v1969_v48, %v1961_v19  ;;  %v756_v50 = vadd.f32 %v753_v36, %v719_v28  ;;  %v615_v24 = vadd.f32 %v612_v11, %v605_v23  ;;  %v755_v43 = vadd.f32 %v752_v41, %v718_v6 }
  0xef   : > { %516 = vperm.xlu1 %1494, %v2002_v7   ;;  %v831_v7 = vrot.slane %v821_v45, %v1753_v39  ;;  %v1118_v28 = vmul.f32 %v2073_v14, %v1961_v19 }
  0xf0   : > { %v619_v15 = vpop.permute.xlu1 %618  ;;  %v604_v26 = vadd.f32 %v601_v5, %v594_v37  ;;  %v793_v48 = vadd.f32 %v790_v52, %v756_v50  ;;  %v792_v61 = vadd.f32 %v789_v33, %v755_v43 }
  0xf1   : > { %v623_v57 = vmul.f32 %v619_v15, %v2087_v25  ;;  %v621_v39 = vmul.f32 %v619_v15, %v2097_v40  ;;  %v622_v8 = vmul.f32 %v619_v15, %v2114_v51  ;;  %v1111_v15 = vmul.f32 %v1109_v13, %v1985_v56 }
  0xf2   : > { %v614_v4 = vadd.f32 %v611_v38, %v604_v26 }
  0xf3   : > { %802 = vrot.lane.b32.xlu1 %v794_v47, %s1567_s17  ;;  %v626_v59 = vadd.f32 %v623_v57, %v616_v34  ;;  %v625_v27 = vadd.f32 %v622_v8, %v615_v24  ;;  %v1119_v57 = vmul.f32 %v2073_v14, %v1974_v53  ;;  %v1121_v38 = vadd.f32 %v1118_v28, %v1111_v15 }
  0xf4   : > { %v624_v60 = vadd.f32 %v621_v39, %v614_v4  ;;  %v876_v21 = vpop.permute.xlu1 %875  ;;  %v1123_v14 = vadd.f32 %v1120_v42, %v1113_v49 }
  0xf5   : > { %634 = vrot.lane.b32.xlu0 %v626_v59, %s1565_s8  ;;  %v878_v29 = vmul.f32 %v876_v21, %v2097_v40  ;;  %v880_v45 = vmul.f32 %v876_v21, %v2087_v25 }
  0xf7   : > { %836 = vrot.lane.b32.xlu1 %v831_v7, %s1569_s21  ;;  %v881_v47 = vadd.f32 %v878_v29, %v2059_v9  ;;  %v883_v5 = vadd.f32 %v880_v45, %v2063_v12  ;;  %v1112_v9 = vmul.f32 %v1109_v13, %v1988_v63  ;;  %v879_v12 = vmul.f32 %v876_v21, %v2114_v51  ;;  %s1500_s21 = sshll.u32 %s1573_s28, 4  ;;  %s1501_s21 = int_to_ptr.vmem [resolvable:$false] %s1500_s21 }
  0xf9   : > { %800 = vrot.lane.b32.xlu0 %v793_v48, %s1567_s17  ;;  %v1126_v30 = vpop.permute.xlu1 %1125  ;;  %v1122_v11 = vadd.f32 %v1119_v57, %v1112_v9  ;;  %v882_v41 = vadd.f32 %v879_v12, %v2061_v10 }
  0xfa   : > { %v1128_v36 = vmul.f32 %v1126_v30, %v2045_v44  ;;  %v1129_v26 = vmul.f32 %v1126_v30, %v2048_v58  ;;  %v1130_v6 = vmul.f32 %v1126_v30, %v2051_v1 }
  0xfb   : > { %630 = vrot.lane.b32.xlu1 %v624_v60, %s1565_s8 }
  0xfc   : > { %v1131_v55 = vadd.f32 %v1128_v36, %v1121_v38  ;;  %v1132_v60 = vadd.f32 %v1129_v26, %v1122_v11  ;;  %v1133_v29 = vadd.f32 %v1130_v6, %v1123_v14 }
  0xfe   : > { %v1136_v17 = vpop.permute.xlu1 %1135 }
  0xff   : > { %632 = vrot.lane.b32.xlu1 %v625_v27, %s1565_s8  ;;  %v1138_v59 = vmul.f32 %v1136_v17, %v2097_v40  ;;  %v1139_v4 = vmul.f32 %v1136_v17, %v2114_v51  ;;  %v1140_v27 = vmul.f32 %v1136_v17, %v2087_v25  ;;  %s269_s8 = sand.u32 1, %s1550_s25  }
 0x100   : > { %s1402_s9 = sshll.u32 %s269_s8, 3  ;;  %s1325_s19 = scalar_lea.sflag [#allocation4], %s269_s8 }
 0x101   : > { %v1141_v8 = vadd.f32 %v1138_v59, %v1131_v55  ;;  %v1142_v13 = vadd.f32 %v1139_v4, %v1132_v60  ;;  %s271_s14 = scalar_lea.vmem [#allocation3], %s1402_s9 }
 0x102   : > { %v2131_v2 = vpop.permute.xlu1 %1077  ;;  %s1339_s15 = sshll.u32 %s271_s14, 4  ;;  %s2196_s15 = int_to_ptr.vmem [resolvable:$true] %s1339_s15 }
 0x103   : > { %798 = vrot.lane.b32.xlu1 %v792_v61, %s1567_s17  ;;  %v1081_v57 = vsel %vm636_vm1, %v2131_v2, %v2129_v20  ;;  %s1496_s20 = scalar_lea.vmem %s2196_s15, 128  ;;  %p1503_p0 = scmp.lt.s32.totalorder %s2196_s15, %s1501_s21 }
 0x104   : > { %p1497_p11 = scmp.ne.s32.totalorder %s2196_s15, %s1496_s20 }
 0x106   : > { %p1498_p12 = pnand %p1497_p11, %p1652_p5 }
 0x108   : > { %p1499_p13 = pneg %p1498_p12 }
 0x132   : > { %v1190_v35 = vpop.permute.xlu0 %1189 }
 0x136   : > { %v994_v0 = vpop.permute.xlu0 %993 }
 0x137   : > { %v1001_v50 = vadd.f32 %v994_v0, %v883_v5 }
 0x13a   : > { %v1048_v16 = vpop.permute.xlu1 %1047  ;;  %v1046_v62 = vpop.permute.xlu0 %1045 }
 0x13b   : > { %v1050_v18 = vsel %vm804_vm0, %v1046_v62, %v1048_v16 }
 0x13c   : > { %v1056_v39 = vadd.f32 %v1050_v18, %v1001_v50 }
 0x13e   : > { %v1186_v7 = vpop.permute.xlu0 %1185  ;;  %v1087_v61 = vmul.f32 %v2129_v20, %v1056_v39 }
 0x13f   : > { %v1196_v43 = vadd.f32 %v1186_v7, %v1141_v8 }
 0x144   : > { %v2133_v54 = vpop.permute.xlu1 %1244  ;;  %v1243_v48 = vpop.permute.xlu0 %1242 }
 0x148   : > { %v992_v46 = vpop.permute.xlu1 %991  ;;  %v1275_v16 = vpop.permute.xlu0 %1274 }
 0x149   : > { %v999_v34 = vadd.f32 %v992_v46, %v881_v47  ;;  %v995_v24 = vsel %vm636_vm1, %v992_v46, %v994_v0  ;;  %v1143_v46 = vadd.f32 %v1140_v27, %v1133_v29 }
 0x14a   : > { %v1000_v45 = vadd.f32 %v995_v24, %v882_v41 }
 0x14c   : > { %v1044_v37 = vpop.permute.xlu1 %1043 }
 0x14d   : > { %v1054_v52 = vadd.f32 %v1044_v37, %v999_v34  ;;  %v1049_v21 = vsel %vm804_vm0, %v1044_v37, %v1046_v62 }
 0x14e   : > { %v1055_v0 = vadd.f32 %v1049_v21, %v1000_v45 }
 0x14f   : > { %v1085_v3 = vmul.f32 %v2131_v2, %v1054_v52 }
 0x150   : > { %v1188_v23 = vpop.permute.xlu1 %1187 }
 0x151   : > { %1091 = vrot.lane.b32.xlu0 %v1085_v3, %s1570_s22  ;;  %v1191_v33 = vsel %vm636_vm1, %v1186_v7, %v1188_v23  ;;  %v1192_v10 = vsel %vm636_vm1, %v1188_v23, %v1190_v35  ;;  %v1086_v7 = vmul.f32 %v1081_v57, %v1055_v0  ;;  %v1247_v35 = vsel %vm804_vm0, %v1243_v48, %v2133_v54 }
 0x152   : > { %v1197_v17 = vadd.f32 %v1191_v33, %v1142_v13  ;;  %v1198_v62 = vadd.f32 %v1192_v10, %v1143_v46 }
 0x154   : > { %v1241_v30 = vpop.permute.xlu1 %1240  ;;  %v1253_v37 = vadd.f32 %v1247_v35, %v1198_v62 }
 0x155   : > { %v1246_v28 = vsel %vm804_vm0, %v1241_v30, %v1243_v48  ;;  %v1251_v47 = vadd.f32 %v1241_v30, %v1196_v43  ;;  %1095 = vrot.lane.b32.xlu0 %v1087_v61, %s1570_s22 }
 0x156   : > { %v1252_v36 = vadd.f32 %v1246_v28, %v1197_v17 }
 0x157   : > { %v1283_v15 = vmul.f32 %v1275_v16, %v1251_v47 }
 0x158   : > { %v1277_v5 = vpop.permute.xlu1 %1276 }
 0x159   : > { %v1279_v34 = vsel %vm1278_vm2, %v1275_v16, %v1277_v5  ;;  %1289 = vrot.lane.b32.xlu1 %v1283_v15, %s1571_s23  ;;  %v1285_v38 = vmul.f32 %v1277_v5, %v1253_v37  ;;  %v444_v50 = vpop.permute.xlu0 %443 }
 0x15a   : > { %v1284_v18 = vmul.f32 %v1279_v34, %v1252_v36  ;;  %v477_v54 = vmul.f32 %v1991_v22, %v444_v50  ;;  %v475_v49 = vmul.f32 %v1985_v56, %v444_v50  ;;  %v476_v8 = vmul.f32 %v1988_v63, %v444_v50 }
 0x15c   : > { %1291 = vrot.lane.b32.xlu0 %v1284_v18, %s1571_s23 }
 0x15d   : > { %1093 = vrot.lane.b32.xlu1 %v1086_v7, %s1570_s22  ;;  %s1502_s22 = scalar_lea.vmem %s1501_s21, 256 }
 0x15e   : > { %v554_v9 = vpop.permute.xlu0 %553  ;;  %p1504_p1 = scmp.lt.s32.totalorder %s1502_s22, %s1496_s20 }
 0x15f   : > { %v585_v22 = vmul.f32 %v2087_v25, %v554_v9  ;;  %v584_v43 = vmul.f32 %v2114_v51, %v554_v9 }
 0x160   : > { %p1505_p2 = por %p1504_p1, %p1503_p0 }
 0x161   : > { %1293 = vrot.lane.b32.xlu1 %v1285_v38, %s1571_s23 }
 0x162   : > { %v835_v12 = vpop.permute.xlu0 %834  ;;  %p1506_p3 = pnand %p1505_p2, %p1499_p13 }
 0x167   : > { %v635_v2 = vpop.permute.xlu0 %634 }
 0x169   : > { %v480_v59 = vpop.permute.xlu1 %479 }
 0x16a   : > { %v511_v20 = vmul.f32 %v1977_v31, %v480_v59  ;;  %v509_v55 = vmul.f32 %v1961_v19, %v480_v59  ;;  %v510_v48 = vmul.f32 %v1974_v53, %v480_v59 }
 0x16b   : > { %v801_v31 = vpop.permute.xlu0 %800 }
 0x16c   : > { %v514_v4 = vadd.f32 %v511_v20, %v477_v54  ;;  %v512_v23 = vadd.f32 %v509_v55, %v475_v49  ;;  %v513_v41 = vadd.f32 %v510_v48, %v476_v8 }
 0x16e   : > { %v517_v52 = vpop.permute.xlu1 %516 }
 0x16f   : > { %v548_v3 = vmul.f32 %v2051_v1, %v517_v52  ;;  %v546_v11 = vmul.f32 %v2045_v44, %v517_v52  ;;  %v547_v14 = vmul.f32 %v2048_v58, %v517_v52  ;;  %v583_v1 = vmul.f32 %v2097_v40, %v554_v9 }
 0x171   : > { %v551_v6 = vadd.f32 %v548_v3, %v514_v4  ;;  %v549_v19 = vadd.f32 %v546_v11, %v512_v23  ;;  %v550_v24 = vadd.f32 %v547_v14, %v513_v41 }
 0x172   : > { %v803_v42 = vpop.permute.xlu1 %802 }
 0x173   : > { %v588_v56 = vadd.f32 %v585_v22, %v551_v6  ;;  %v586_v27 = vadd.f32 %v583_v1, %v549_v19  ;;  %v587_v21 = vadd.f32 %v584_v43, %v550_v24  ;;  %v806_v25 = vsel %vm804_vm0, %v801_v31, %v803_v42 }
 0x175   : > { %v644_v61 = vadd.f32 %v635_v2, %v588_v56 }
 0x176   : > { %v837_v26 = vpop.permute.xlu1 %836 }
 0x177   : > { %v812_v45 = vadd.f32 %v806_v25, %v644_v61  ;;  %v839_v47 = vsel %vm838_vm3, %v835_v12, %v837_v26 }
 0x179   : > { %v845_v0 = vmul.f32 %v837_v26, %v812_v45 }
 0x17a   : > { %v631_v39 = vpop.permute.xlu1 %630 }
 0x17e   : > { %v633_v60 = vpop.permute.xlu1 %632 }
 0x17f   : > { %v637_v44 = vsel %vm636_vm1, %v631_v39, %v633_v60  ;;  %v638_v58 = vsel %vm636_vm1, %v633_v60, %v635_v2 }
 0x180   : > { %v642_v33 = vadd.f32 %v637_v44, %v586_v27  ;;  %v643_v40 = vadd.f32 %v638_v58, %v587_v21 }
 0x182   : > { %v799_v63 = vpop.permute.xlu1 %798 }
 0x183   : > { %v805_v13 = vsel %vm804_vm0, %v799_v63, %v801_v31  ;;  %v810_v30 = vadd.f32 %v799_v63, %v642_v33 }
 0x184   : > { %v811_v28 = vadd.f32 %v805_v13, %v643_v40 }
 0x185   : > { %v843_v51 = vmul.f32 %v835_v12, %v810_v30 }
 0x186   : > { %v844_v36 = vmul.f32 %v839_v47, %v811_v28 }
 0x1c3   : > { %v1092_v53 = vpop.permute.xlu0 %1091 }
 0x1c7   : > { %v1096_v16 = vpop.permute.xlu0 %1095 }
 0x1c8   : > { %v1105_v62 = vadd.f32 %v1096_v16, %v845_v0 }
 0x1cb   : > { %v1290_v29 = vpop.permute.xlu1 %1289 }
 0x1ce   : > { %v1292_v10 = vpop.permute.xlu0 %1291 }
 0x1cf   : > { %v1094_v17 = vpop.permute.xlu1 %1093  ;;  %v1296_v34 = vsel %vm1295_vm5, %v1290_v29, %v1292_v10 }
 0x1d0   : > { %v1098_v46 = vsel %vm1097_vm4, %v1092_v53, %v1094_v17  ;;  %v1099_v15 = vsel %vm1097_vm4, %v1094_v17, %v1096_v16 }
 0x1d1   : > { %v1103_v5 = vadd.f32 %v1098_v46, %v843_v51  ;;  %v1104_v57 = vadd.f32 %v1099_v15, %v844_v36 }
 0x1d3   : > { %v1301_v18 = vadd.f32 %v1296_v34, %v1103_v5  ;;  %v1294_v7 = vpop.permute.xlu1 %1293 }
 0x1d4   : > { %v1297_v35 = vsel %vm1295_vm5, %v1292_v10, %v1294_v7  ;;  %v1303_v37 = vadd.f32 %v1294_v7, %v1105_v62 }
 0x1d5   : > { %v1302_v38 = vadd.f32 %v1297_v35, %v1104_v57  ;;  %v1304_v50 = vmul.f32 0.5, %v1301_v18 }
 0x1d6   : > { %v1306_v59 = vmul.f32 0.5, %v1303_v37 }
 0x1d7   : > { %v1305_v52 = vmul.f32 0.5, %v1302_v38 }
 0x1d8   : > { %1313 = vrot.lane.b32.xlu1 %v1306_v59, %s1572_s29 }
 0x1d9   : > { %v1310_v9 = vcombine.low %v1304_v50, %v1305_v52 }
 0x1db   : > { %1311 = vrot.lane.b32.xlu0 %v1310_v9, %s1572_s29 }
 0x24a   : > { %v1314_v42 = vpop.permute.xlu1 %1313 }
 0x24b   : > { %v1316_v26 = vrot.slane %v1314_v42, 4 }
 0x24d   : > { %v1312_v12 = vpop.permute.xlu0 %1311 }
 0x24e   : > { %v1315_v20 = vrot.slane %v1312_v12, 4 }
 0x250   : > { %v1318_v2 = vsel %vm1317_vm6, %v1315_v20, %v1316_v26 }
 0x251   : > { %v1320_v55 = vsel %vm1319_vm7, %v1312_v12, %v1318_v2 }
 0x252   : > { %v1322_v39 = vadd.f32 %v1320_v55, %v1750_v32 }
 0x254   : > { %1323 = vst [vmem:[%s271_s14] sm:$0xff] %v1322_v39 }
 0x255   : > { %1509 = shalt.err (!%p1506_p3)
}
 0x256   : > { %s1510_s23 = scalar_lea.hbm %s2194_s18, 128  ;;  %s1514_s9 = scalar_lea.hbm %s2243_s7, 256 }
 0x257   : > { %p1511_p4 = scmp.ne.s32.totalorder %s2194_s18, %s1510_s23  ;;  %p1515_p9 = scmp.lt.u32.totalorder %s2194_s18, %s2243_s7 }
 0x258   : > { %p1516_p10 = scmp.lt.u32.totalorder %s1514_s9, %s1510_s23  ;;  %p1518_p12 = scmp.lt.u32.totalorder %s1510_s23, %s2194_s18 }
 0x259   : > { %p1512_p7 = pnand %p1511_p4, %p1652_p5 }
 0x25a   : > { %p1517_p11 = por %p1516_p10, %p1515_p9 }
 0x25b   : > { %p1513_p8 = pneg %p1512_p7 }
 0x25c   : > { %p1519_p13 = por %p1518_p12, %p1517_p11 }
 0x25e   : > { %p1520_p0 = pnand %p1519_p13, %p1513_p8 }
 0x260   : > { %1523 = shalt.err (!%p1520_p0)
}
 0x261   : > { %1412 = dma.vmem_to_hbm [thread:$0]  (%p1652_p5), %s2196_s15, 128, %s2194_s18, %s1325_s19  }
 0x262 PF: > { %p1418_p1 = scmp.ge.s32.totalorder %s1558_s27, 2  ;;  %s1351_s16 = sand.u32 1, %s1546_s24  }
 0x263   : > { %s1352_s17 = scalar_lea.sflag [#allocation4], %s1351_s16 }
 0x264   : > { %p1415_p2 = pnand %p1418_p1, %p1656_p6 }
 0x266   : > { %1541 = dma.done.wait (!%p1415_p2), %s1352_s17, 128  }
 0x267   : > { %1543 = vsyncadd (!%p1415_p2), %s1352_s17, 4294967168  ;;  %p17_p3 = scmp.ge.s32.totalorder %s1639_s30, 4   ;;  %s2246_s24 = smov %s1550_s25 }
 0x268   : > { %s2247_s25 = smov %s1554_s26  ;;  %s2248_s26 = smov %s1650_s10 }
 0x269   : > { %s2249_s27 = smov %s1639_s30  ;;  %19 = sbr.rel (!%p17_p3) target bundleno = 3 (0x3), region = 83 }
 0x270   :  { %1357 = vsyncpa [#allocation4], 1 }
 0x271   :  { %1359 = vsyncpa [#allocation4 + $0x1], 1 }

</bundles_post_ra>
